<compile_context>
chip_gen: v7x
topology: tpu7x:2x2x1
jax: 0.10.0
libtpu: 0.0.40
codegen_flags: <defaults>
</compile_context>

<pallas_src>
import functools

import jax
import jax.numpy as jnp
import numpy as np
from jax.experimental import pallas as pl
from jax.experimental.pallas import tpu as pltpu

LANE = 128


def _round_up(x, m=LANE):
    return (x + m - 1) // m * m


def meta_recommender_kernel(hidden_size, item_num, item_mem_num, item_emb_size,
                            s1_cols, s2_cols,
                            # inputs
                            ue_ref, mem_ref, hw_ref, bias_ref,
                            s1w_ref, s2w_ref, s3w_ref,
                            # outputs
                            out1_o, out2_o, item_o, cf_o):
    f32 = jnp.float32
    bf16 = jnp.bfloat16

    # cf_vec = user_emb @ memory  (bf16 MXU operands, f32 accumulation).
    cf = jnp.dot(ue_ref[...].astype(bf16), mem_ref[...],
                 preferred_element_type=f32)
    cf_o[...] = cf

    # ---- fused bias slab: every segment offset is a multiple of 128 lanes ----
    off = 0
    hb = bias_ref[:, off:off + 3 * hidden_size]
    off += 3 * hidden_size
    s1b = bias_ref[:, off:off + s1_cols]
    off += s1_cols
    s2b = bias_ref[:, off:off + s2_cols]
    off += s2_cols
    s3b = bias_ref[:, off:]

    # ---- fused first-stage hypernetwork: one (B,mem) @ (mem, 3*hidden) ----
    # NOTE: cf is deliberately re-rounded to bf16 here (see header comment).
    hid_all = jnp.dot(cf.astype(bf16), hw_ref[...],
                      preferred_element_type=f32) + hb
    hid_all = jnp.maximum(hid_all, 0.0)                  # ReLU in f32 on VPU
    # slices at hidden_size (multiple of 128) boundaries -> layout clean
    hid1 = hid_all[:, :hidden_size].astype(bf16)
    hid2 = hid_all[:, hidden_size:2 * hidden_size].astype(bf16)
    hid3 = hid_all[:, 2 * hidden_size:].astype(bf16)

    # ---- fused, 128-lane-padded second stage ----
    out1_o[...] = (jnp.dot(hid1, s1w_ref[...], preferred_element_type=f32)
                   + s1b)
    out2_o[...] = (jnp.dot(hid2, s2w_ref[...], preferred_element_type=f32)
                   + s2b)
    out3 = (jnp.dot(hid3, s3w_ref[...], preferred_element_type=f32)
            + s3b)

    # ---- item-embedding bmm: one batched bf16 contraction, one store ----
    # The relayout into (B, item_num, mem) / (B, mem, emb) happens exactly once.
    nl = item_num * item_mem_num
    batch = cf.shape[0]
    el = out3[:, :nl].reshape(batch, item_num, item_mem_num).astype(bf16)
    er = out3[:, nl:].reshape(batch, item_mem_num, item_emb_size).astype(bf16)
    item_o[...] = jnp.einsum('bim,bme->bie', el, er,
                             preferred_element_type=f32)


def init_params(key, user_num, item_num, item_emb_size, item_mem_num,
                user_emb_size, mem_size, hidden_size):
    """Deterministic f32 parameter init. Linear weights stored as (in, out)."""
    keys = iter(jax.random.split(key, 32))

    def lin(in_f, out_f):
        w = jax.random.normal(next(keys), (in_f, out_f), jnp.float32) / np.sqrt(in_f)
        b = jax.random.normal(next(keys), (1, out_f), jnp.float32) * 0.01
        return w, b

    p = {}
    p['user_embedding'] = jax.random.normal(
        next(keys), (user_num, user_emb_size), jnp.float32) * 0.1
    p['memory'] = jax.random.normal(
        next(keys), (user_emb_size, mem_size), jnp.float32) / np.sqrt(user_emb_size)

    int_size = item_emb_size // 4
    p['h1_w'], p['h1_b'] = lin(mem_size, hidden_size)
    p['w1_w'], p['w1_b'] = lin(hidden_size, item_emb_size * int_size)
    p['bl1_w'], p['bl1_b'] = lin(hidden_size, int_size)

    p['h2_w'], p['h2_b'] = lin(mem_size, hidden_size)
    p['w2_w'], p['w2_b'] = lin(hidden_size, int_size * 1)
    p['bl2_w'], p['bl2_b'] = lin(hidden_size, 1)

    p['h3_w'], p['h3_b'] = lin(mem_size, hidden_size)
    p['e1_w'], p['e1_b'] = lin(hidden_size, item_num * item_mem_num)
    p['e2_w'], p['e2_b'] = lin(hidden_size, item_mem_num * item_emb_size)
    return p


def fuse_params(p, *, item_emb_size):
    """Host-side, one-time fusion/padding into 7 kernel inputs.

    Weights are concatenated along the output (lane) dim, zero-padded to a
    multiple of 128 lanes, and stored as bf16 (MXU-native).  All biases are
    fused (with matching padding) into a single f32 row with 128-aligned
    segment offsets.
    """
    bf16 = jnp.bfloat16
    int_size = item_emb_size // 4

    s1_real = item_emb_size * int_size + int_size   # [w1 | b1] = 264
    s2_real = int_size + 1                          # [w2 | b2] = 9
    s1_cols = _round_up(s1_real)                    # 384
    s2_cols = _round_up(s2_real)                    # 128

    def pad_cols(x, cols):
        pad = cols - x.shape[1]
        return jnp.pad(x, ((0, 0), (0, pad))) if pad else x

    h_all_w = jnp.concatenate([p['h1_w'], p['h2_w'], p['h3_w']], axis=1)
    h_all_b = jnp.concatenate([p['h1_b'], p['h2_b'], p['h3_b']], axis=1)

    s1_w = pad_cols(jnp.concatenate([p['w1_w'], p['bl1_w']], axis=1), s1_cols)
    s1_b = pad_cols(jnp.concatenate([p['w1_b'], p['bl1_b']], axis=1), s1_cols)
    s2_w = pad_cols(jnp.concatenate([p['w2_w'], p['bl2_w']], axis=1), s2_cols)
    s2_b = pad_cols(jnp.concatenate([p['w2_b'], p['bl2_b']], axis=1), s2_cols)
    s3_w = jnp.concatenate([p['e1_w'], p['e2_w']], axis=1)       # 768 cols
    s3_b = jnp.concatenate([p['e1_b'], p['e2_b']], axis=1)

    bias_all = jnp.concatenate([h_all_b, s1_b, s2_b, s3_b], axis=1)  # (1, 2816)

    f = {
        'user_embedding': p['user_embedding'],          # f32 gather table
        'memory': p['memory'].astype(bf16),
        'h_all_w': h_all_w.astype(bf16),
        'bias_all': bias_all,                           # f32 (VPU adds)
        's1_w': s1_w.astype(bf16),
        's2_w': s2_w.astype(bf16),
        's3_w': s3_w.astype(bf16),
    }
    return jax.tree_util.tree_map(jnp.asarray, f), (s1_cols, s2_cols)


def meta_recommender_forward(fused, pad_cols, user_id, *, item_num,
                             item_emb_size, item_mem_num, user_emb_size,
                             mem_size, hidden_size):
    s1_cols, s2_cols = pad_cols
    # Glue: embedding gather in plain JAX.
    # TODO(synk): at serving batch sizes, move this gather into the kernel via
    # PrefetchScalarGridSpec(num_scalar_prefetch=1) with user_id in SMEM and a
    # pl.Element(1) row-gather BlockSpec on the embedding table.
    user_emb = fused['user_embedding'][user_id]          # (B, user_emb_size), f32
    B = user_emb.shape[0]
    int_size = item_emb_size // 4
    w_cols = item_emb_size * int_size                    # 256
    s3_cols = item_num * item_mem_num + item_mem_num * item_emb_size

    vmem = pl.BlockSpec(memory_space=pltpu.MemorySpace.VMEM)
    kernel = functools.partial(meta_recommender_kernel, hidden_size, item_num,
                               item_mem_num, item_emb_size, s1_cols, s2_cols)

    out_shapes = (
        jax.ShapeDtypeStruct((B, s1_cols), jnp.float32),                  # [w1|b1|pad]
        jax.ShapeDtypeStruct((B, s2_cols), jnp.float32),                  # [w2|b2|pad]
        jax.ShapeDtypeStruct((B, item_num, item_emb_size), jnp.float32),  # item emb
        jax.ShapeDtypeStruct((B, mem_size), jnp.float32),                 # cf_vec
    )

    args = (user_emb, fused['memory'], fused['h_all_w'], fused['bias_all'],
            fused['s1_w'], fused['s2_w'], fused['s3_w'])

    flops = 2 * B * (user_emb_size * mem_size
                     + mem_size * 3 * hidden_size
                     + hidden_size * (s1_cols + s2_cols + s3_cols)
                     + item_num * item_mem_num * item_emb_size)
    bytes_accessed = int(
        sum(int(np.prod(a.shape)) * np.dtype(a.dtype).itemsize for a in args)
        + sum(int(np.prod(s.shape)) * np.dtype(s.dtype).itemsize for s in out_shapes))

    # TODO(synk): at production batch sizes add a leading batch grid axis marked
    # dimension_semantics=("parallel", ...) with constant index_maps on the
    # weight slabs (uses v7x's 2nd TensorCore, keeps slabs resident), and tile
    # s3_w along its output lane axis (~1-2k lanes per tile) sized against
    # v7x's 64 MiB per-TC VMEM once item_num grows.
    out1, out2, item_embedding, cf_vec = pl.pallas_call(
        kernel,
        out_shape=out_shapes,
        in_specs=[vmem] * len(args),
        out_specs=tuple([vmem] * len(out_shapes)),
        compiler_params=pltpu.CompilerParams(vmem_limit_bytes=32 * 1024 * 1024),
        cost_estimate=pl.CostEstimate(flops=flops, transcendentals=0,
                                      bytes_accessed=bytes_accessed),
    )(*args)

    # Glue: slice real columns off the padded slabs; match PyTorch .view().
    output_weight = [out1[:, :w_cols].reshape(B, item_emb_size, int_size),
                     out2[:, :int_size].reshape(B, int_size, 1)]
    output_bias = [out1[:, w_cols:w_cols + int_size].reshape(B, 1, int_size),
                   out2[:, int_size:int_size + 1].reshape(B, 1, 1)]
    return output_weight, output_bias, item_embedding, cf_vec


def reference_forward(params, user_id, *, item_num, item_emb_size, item_mem_num):
    """Pure-JAX f32 reference mirroring the PyTorch forward."""
    relu = lambda x: jnp.maximum(x, 0.0)
    int_size = item_emb_size // 4
    ue = params['user_embedding'][user_id]
    cf = ue @ params['memory']
    B = cf.shape[0]

    hid1 = relu(cf @ params['h1_w'] + params['h1_b'])
    w1 = (hid1 @ params['w1_w'] + params['w1_b']).reshape(B, item_emb_size, int_size)
    b1 = (hid1 @ params['bl1_w'] + params['bl1_b']).reshape(B, 1, int_size)

    hid2 = relu(cf @ params['h2_w'] + params['h2_b'])
    w2 = (hid2 @ params['w2_w'] + params['w2_b']).reshape(B, int_size, 1)
    b2 = (hid2 @ params['bl2_w'] + params['bl2_b']).reshape(B, 1, 1)

    hid3 = relu(cf @ params['h3_w'] + params['h3_b'])
    el = (hid3 @ params['e1_w'] + params['e1_b']).reshape(B, item_num, item_mem_num)
    er = (hid3 @ params['e2_w'] + params['e2_b']).reshape(B, item_mem_num, item_emb_size)
    item_embedding = jnp.einsum('bim,bme->bie', el, er)
    return [w1, w2], [b1, b2], item_embedding, cf


if __name__ == "__main__":
    # Small but structurally faithful shapes (module defaults except user/item num).
    USER_NUM = 16
    ITEM_NUM = 64
    ITEM_EMB_SIZE = 32
    ITEM_MEM_NUM = 8
    USER_EMB_SIZE = 32
    MEM_SIZE = 128
    HIDDEN_SIZE = 512
    BATCH = 4

    key = jax.random.PRNGKey(0)
    pkey, ukey = jax.random.split(key)
    params = init_params(pkey, USER_NUM, ITEM_NUM, ITEM_EMB_SIZE, ITEM_MEM_NUM,
                         USER_EMB_SIZE, MEM_SIZE, HIDDEN_SIZE)
    fused, pad_cols = fuse_params(params, item_emb_size=ITEM_EMB_SIZE)  # once, outside jit
    user_id = jax.random.randint(ukey, (BATCH,), 0, USER_NUM)

    out_w, out_b, item_emb, cf_vec = meta_recommender_forward(
        fused, pad_cols, user_id, item_num=ITEM_NUM, item_emb_size=ITEM_EMB_SIZE,
        item_mem_num=ITEM_MEM_NUM, user_emb_size=USER_EMB_SIZE,
        mem_size=MEM_SIZE, hidden_size=HIDDEN_SIZE)
    jax.block_until_ready((out_w, out_b, item_emb, cf_vec))

    # Sanity check vs. f32 pure-JAX reference (tol absorbs bf16 MXU operands).
    rw, rb, ri, rc = reference_forward(
        params, user_id, item_num=ITEM_NUM, item_emb_size=ITEM_EMB_SIZE,
        item_mem_num=ITEM_MEM_NUM)
    np.testing.assert_allclose(np.asarray(out_w[0]), np.asarray(rw[0]), rtol=2e-2, atol=2e-2)
    np.testing.assert_allclose(np.asarray(out_w[1]), np.asarray(rw[1]), rtol=2e-2, atol=2e-2)
    np.testing.assert_allclose(np.asarray(out_b[0]), np.asarray(rb[0]), rtol=2e-2, atol=2e-2)
    np.testing.assert_allclose(np.asarray(out_b[1]), np.asarray(rb[1]), rtol=2e-2, atol=2e-2)
    np.testing.assert_allclose(np.asarray(item_emb), np.asarray(ri), rtol=2e-2, atol=2e-2)
    np.testing.assert_allclose(np.asarray(cf_vec), np.asarray(rc), rtol=2e-2, atol=2e-2)

    assert out_w[0].shape == (BATCH, ITEM_EMB_SIZE, ITEM_EMB_SIZE // 4)
    assert out_w[1].shape == (BATCH, ITEM_EMB_SIZE // 4, 1)
    assert out_b[0].shape == (BATCH, 1, ITEM_EMB_SIZE // 4)
    assert out_b[1].shape == (BATCH, 1, 1)
    assert item_emb.shape == (BATCH, ITEM_NUM, ITEM_EMB_SIZE)
    assert cf_vec.shape == (BATCH, MEM_SIZE)

    print("KERNEL_OK")
</pallas_src>

<mosaic_0001>
module attributes {stable_mosaic.version = 11 : i64} {
  func.func @meta_recommender_kernel(%arg0: memref<4x32xf32, #tpu.memory_space<vmem>>, %arg1: memref<32x128xbf16, #tpu.memory_space<vmem>>, %arg2: memref<128x1536xbf16, #tpu.memory_space<vmem>>, %arg3: memref<1x2816xf32, #tpu.memory_space<vmem>>, %arg4: memref<512x384xbf16, #tpu.memory_space<vmem>>, %arg5: memref<512x128xbf16, #tpu.memory_space<vmem>>, %arg6: memref<512x768xbf16, #tpu.memory_space<vmem>>, %arg7: memref<4x384xf32, #tpu.memory_space<vmem>>, %arg8: memref<4x128xf32, #tpu.memory_space<vmem>>, %arg9: memref<4x64x32xf32, #tpu.memory_space<vmem>>, %arg10: memref<4x128xf32, #tpu.memory_space<vmem>>) attributes {dimension_semantics = [], scalar_prefetch = 0 : i64, scratch_operands = 0 : i64, tpu.core_type = #tpu.core_type<tc>} {
    %c0 = arith.constant 0 : index
    %c0_0 = arith.constant 0 : index
    %0 = vector.load %arg0[%c0, %c0_0] : memref<4x32xf32, #tpu.memory_space<vmem>>, vector<4x32xf32>
    %1 = arith.truncf %0 : vector<4x32xf32> to vector<4x32xbf16>
    %c0_1 = arith.constant 0 : index
    %c0_2 = arith.constant 0 : index
    %2 = vector.load %arg1[%c0_1, %c0_2] : memref<32x128xbf16, #tpu.memory_space<vmem>>, vector<32x128xbf16>
    %cst = arith.constant dense<0.000000e+00> : vector<4x128xf32>
    %3 = tpu.matmul %1, %2, %cst {dimension_numbers = #tpu.dot_dimension_numbers<[1], [0], [0], [1], [0, 0, 1, 1], [], []>} : vector<4x32xbf16>, vector<32x128xbf16>, vector<4x128xf32> -> vector<4x128xf32>
    %c0_3 = arith.constant 0 : index
    %c0_4 = arith.constant 0 : index
    %4 = vector.load %arg10[%c0_3, %c0_4] : memref<4x128xf32, #tpu.memory_space<vmem>>, vector<4x128xf32>
    tpu.vector_store %arg10[%c0_3, %c0_4], %3 {strides = array<i32>} : memref<4x128xf32, #tpu.memory_space<vmem>>, vector<4x128xf32>,
    %c0_5 = arith.constant 0 : index
    %c0_6 = arith.constant 0 : index
    %5 = vector.load %arg3[%c0_5, %c0_6] : memref<1x2816xf32, #tpu.memory_space<vmem>>, vector<1x1536xf32>
    %c0_7 = arith.constant 0 : index
    %c1536 = arith.constant 1536 : index
    %6 = vector.load %arg3[%c0_7, %c1536] : memref<1x2816xf32, #tpu.memory_space<vmem>>, vector<1x384xf32>
    %c0_8 = arith.constant 0 : index
    %c1920 = arith.constant 1920 : index
    %7 = vector.load %arg3[%c0_8, %c1920] : memref<1x2816xf32, #tpu.memory_space<vmem>>, vector<1x128xf32>
    %c0_9 = arith.constant 0 : index
    %c2048 = arith.constant 2048 : index
    %8 = vector.load %arg3[%c0_9, %c2048] : memref<1x2816xf32, #tpu.memory_space<vmem>>, vector<1x768xf32>
    %9 = arith.truncf %3 : vector<4x128xf32> to vector<4x128xbf16>
    %c0_10 = arith.constant 0 : index
    %c0_11 = arith.constant 0 : index
    %10 = vector.load %arg2[%c0_10, %c0_11] : memref<128x1536xbf16, #tpu.memory_space<vmem>>, vector<128x1536xbf16>
    %cst_12 = arith.constant dense<0.000000e+00> : vector<4x1536xf32>
    %11 = tpu.matmul %9, %10, %cst_12 {dimension_numbers = #tpu.dot_dimension_numbers<[1], [0], [0], [1], [0, 0, 1, 1], [], []>} : vector<4x128xbf16>, vector<128x1536xbf16>, vector<4x1536xf32> -> vector<4x1536xf32>
    %12 = vector.broadcast %5 : vector<1x1536xf32> to vector<4x1536xf32>
    %13 = arith.addf %11, %12 : vector<4x1536xf32>
    %cst_13 = arith.constant 0.000000e+00 : f32
    %14 = vector.broadcast %cst_13 : f32 to vector<4x1536xf32>
    %15 = arith.maximumf %13, %14 : vector<4x1536xf32>
    %16 = vector.extract_strided_slice %15 {offsets = [0, 0], sizes = [4, 512], strides = [1, 1]} : vector<4x1536xf32> to vector<4x512xf32>
    %17 = arith.truncf %16 : vector<4x512xf32> to vector<4x512xbf16>
    %18 = vector.extract_strided_slice %15 {offsets = [0, 512], sizes = [4, 512], strides = [1, 1]} : vector<4x1536xf32> to vector<4x512xf32>
    %19 = arith.truncf %18 : vector<4x512xf32> to vector<4x512xbf16>
    %20 = vector.extract_strided_slice %15 {offsets = [0, 1024], sizes = [4, 512], strides = [1, 1]} : vector<4x1536xf32> to vector<4x512xf32>
    %21 = arith.truncf %20 : vector<4x512xf32> to vector<4x512xbf16>
    %c0_14 = arith.constant 0 : index
    %c0_15 = arith.constant 0 : index
    %22 = vector.load %arg4[%c0_14, %c0_15] : memref<512x384xbf16, #tpu.memory_space<vmem>>, vector<512x384xbf16>
    %cst_16 = arith.constant dense<0.000000e+00> : vector<4x384xf32>
    %23 = tpu.matmul %17, %22, %cst_16 {dimension_numbers = #tpu.dot_dimension_numbers<[1], [0], [0], [1], [0, 0, 1, 1], [], []>} : vector<4x512xbf16>, vector<512x384xbf16>, vector<4x384xf32> -> vector<4x384xf32>
    %24 = vector.broadcast %6 : vector<1x384xf32> to vector<4x384xf32>
    %25 = arith.addf %23, %24 : vector<4x384xf32>
    %c0_17 = arith.constant 0 : index
    %c0_18 = arith.constant 0 : index
    %26 = vector.load %arg7[%c0_17, %c0_18] : memref<4x384xf32, #tpu.memory_space<vmem>>, vector<4x384xf32>
    tpu.vector_store %arg7[%c0_17, %c0_18], %25 {strides = array<i32>} : memref<4x384xf32, #tpu.memory_space<vmem>>, vector<4x384xf32>,
    %c0_19 = arith.constant 0 : index
    %c0_20 = arith.constant 0 : index
    %27 = vector.load %arg5[%c0_19, %c0_20] : memref<512x128xbf16, #tpu.memory_space<vmem>>, vector<512x128xbf16>
    %cst_21 = arith.constant dense<0.000000e+00> : vector<4x128xf32>
    %28 = tpu.matmul %19, %27, %cst_21 {dimension_numbers = #tpu.dot_dimension_numbers<[1], [0], [0], [1], [0, 0, 1, 1], [], []>} : vector<4x512xbf16>, vector<512x128xbf16>, vector<4x128xf32> -> vector<4x128xf32>
    %29 = vector.broadcast %7 : vector<1x128xf32> to vector<4x128xf32>
    %30 = arith.addf %28, %29 : vector<4x128xf32>
    %c0_22 = arith.constant 0 : index
    %c0_23 = arith.constant 0 : index
    %31 = vector.load %arg8[%c0_22, %c0_23] : memref<4x128xf32, #tpu.memory_space<vmem>>, vector<4x128xf32>
    tpu.vector_store %arg8[%c0_22, %c0_23], %30 {strides = array<i32>} : memref<4x128xf32, #tpu.memory_space<vmem>>, vector<4x128xf32>,
    %c0_24 = arith.constant 0 : index
    %c0_25 = arith.constant 0 : index
    %32 = vector.load %arg6[%c0_24, %c0_25] : memref<512x768xbf16, #tpu.memory_space<vmem>>, vector<512x768xbf16>
    %cst_26 = arith.constant dense<0.000000e+00> : vector<4x768xf32>
    %33 = tpu.matmul %21, %32, %cst_26 {dimension_numbers = #tpu.dot_dimension_numbers<[1], [0], [0], [1], [0, 0, 1, 1], [], []>} : vector<4x512xbf16>, vector<512x768xbf16>, vector<4x768xf32> -> vector<4x768xf32>
    %34 = vector.broadcast %8 : vector<1x768xf32> to vector<4x768xf32>
    %35 = arith.addf %33, %34 : vector<4x768xf32>
    %36 = vector.extract_strided_slice %35 {offsets = [0, 0], sizes = [4, 512], strides = [1, 1]} : vector<4x768xf32> to vector<4x512xf32>
    %37 = vector.shape_cast %36 : vector<4x512xf32> to vector<4x64x8xf32>
    %38 = arith.truncf %37 : vector<4x64x8xf32> to vector<4x64x8xbf16>
    %39 = vector.extract_strided_slice %35 {offsets = [0, 512], sizes = [4, 256], strides = [1, 1]} : vector<4x768xf32> to vector<4x256xf32>
    %40 = vector.shape_cast %39 : vector<4x256xf32> to vector<4x8x32xf32>
    %41 = arith.truncf %40 : vector<4x8x32xf32> to vector<4x8x32xbf16>
    "tpu.trace_start"() <{level = 10 : i32, message = "bim,bme->bie"}> : () -> ()
    %cst_27 = arith.constant dense<0.000000e+00> : vector<4x64x32xf32>
    %42 = tpu.matmul %38, %41, %cst_27 {dimension_numbers = #tpu.dot_dimension_numbers<[2], [1], [1], [2], [0, 0, 0, 1, 1, 2], [0], [0]>} : vector<4x64x8xbf16>, vector<4x8x32xbf16>, vector<4x64x32xf32> -> vector<4x64x32xf32>
    "tpu.trace_stop"() : () -> ()
    %c0_28 = arith.constant 0 : index
    %c0_29 = arith.constant 0 : index
    %c0_30 = arith.constant 0 : index
    %43 = vector.load %arg9[%c0_28, %c0_29, %c0_30] : memref<4x64x32xf32, #tpu.memory_space<vmem>>, vector<4x64x32xf32>
    tpu.vector_store %arg9[%c0_28, %c0_29, %c0_30], %42 {strides = array<i32>} : memref<4x64x32xf32, #tpu.memory_space<vmem>>, vector<4x64x32xf32>,
    return
  }
}

</mosaic_0001>

<bundles_post_ra>
// kernel: tpu_custom_call.1
= control target key start
LH: loop header
LB: loop body
LE: loop exit
PB: predicated region body
PF: predicated region fallthrough
CT: control target
= control target key end

     0   :  { %16 = vsyncpa [#allocation3], 0  ;;  %s7241_s0 = inlined_call_operand.hbm [shape: f32[4,32], index: 0, kind: input, shape index: {}]   ;;  %s7242_s1 = inlined_call_operand.hbm [shape: bf16[32,128], index: 1, kind: input, shape index: {}]   ;;  %s7243_s2 = inlined_call_operand.hbm [shape: bf16[128,1536], index: 2, kind: input, shape index: {}]   ;;  %s7244_s3 = inlined_call_operand.hbm [shape: f32[1,2816], index: 3, kind: input, shape index: {}]   ;;  %s7245_s4 = inlined_call_operand.hbm [shape: bf16[512,384], index: 4, kind: input, shape index: {}]   ;;  %s7246_s5 = inlined_call_operand.hbm [shape: bf16[512,128], index: 5, kind: input, shape index: {}]   ;;  %s7247_s6 = inlined_call_operand.hbm [shape: bf16[512,768], index: 6, kind: input, shape index: {}]   ;;  %s7248_s7 = inlined_call_operand.hbm [shape: f32[4,384], index: 7, kind: output, shape index: {0}]   ;;  %s7249_s8 = inlined_call_operand.hbm [shape: f32[4,128], index: 8, kind: output, shape index: {1}]   ;;  %s7250_s9 = inlined_call_operand.vmem [shape: f32[4,64,32], index: 9, kind: output, shape index: {2}]   ;;  %s7251_s10 = inlined_call_operand.hbm [shape: f32[4,128], index: 10, kind: output, shape index: {3}]  }
   0x1   :  { %17 = vsyncpa [#allocation6], 0 }
   0x2   :  { %18 = vsyncpa [#allocation9], 0 }
   0x3   :  { %19 = vsyncpa [#allocation12], 0 }
   0x4   :  { %20 = vsyncpa [#allocation4], 0 }
   0x5   :  { %21 = vsyncpa [#allocation16], 0  ;;  %s6420_s13 = smov [#allocation5]   ;;  %s6188_s17 = scalar_lea.hbm %s7242_s1, 256 }
   0x6   :  { %s37_s14 = sshll.u32 %s6420_s13, 4  ;;  %p6189_p0 = scmp.ne.s32.totalorder %s7242_s1, %s6188_s17  ;;  %s38_s14 = int_to_ptr.vmem [resolvable:$true] %s37_s14 }
   0x7   :  { %p6192_p1 = scmp.lt.u32.totalorder %s6188_s17, %s7242_s1 }
   0x9   :  { %p6194_p2 = pnand %p6192_p1, %p6189_p0 }
   0xb   :  { %6197 = shalt.err (!%p6194_p2)
}
   0xc   :  { %s6198_s22 = scalar_lea.vmem %s38_s14, 256  ;;  %p6203_p4 = scmp.lt.s32.totalorder %s38_s14, %s38_s14 }
   0xd   :  { %p6199_p3 = scmp.ne.s32.totalorder %s38_s14, %s6198_s22  ;;  %p6204_p5 = scmp.lt.s32.totalorder %s6198_s22, %s6198_s22 }
   0xf   :  { %p6205_p6 = por %p6204_p5, %p6203_p4 }
  0x11   :  { %p6206_p7 = pnand %p6205_p6, %p6199_p3 }
  0x13   :  { %6209 = shalt.err (!%p6206_p7)
}
  0x14   :  { %s6421_s23 = smov 64   ;;  %s6422_s24 = smov 4  }
  0x15   :  { %43 = dma.hbm_to_vmem [thread:$0]  %s7242_s1, 256, %s38_s14, [#allocation6], %s6421_s23, %s6421_s23, %s6422_s24  }
  0x16   :  { %s6423_s27 = smov [#allocation8]   ;;  %s6424_s29 = smov [#allocation11]  }
  0x17   :  { %s62_s28 = sshll.u32 %s6423_s27, 4  ;;  %s83_s30 = sshll.u32 %s6424_s29, 4  ;;  %s63_s28 = int_to_ptr.vmem [resolvable:$true] %s62_s28  ;;  %s84_s30 = int_to_ptr.vmem [resolvable:$true] %s83_s30 }
  0x18   :  { %s6210_s13 = scalar_lea.hbm %s7244_s3, 352 }
  0x19   :  { %p6211_p8 = scmp.ne.s32.totalorder %s7244_s3, %s6210_s13  ;;  %p6214_p9 = scmp.lt.u32.totalorder %s6210_s13, %s7244_s3 }
  0x1b   :  { %p6216_p10 = pnand %p6214_p9, %p6211_p8 }
  0x1d   :  { %6219 = shalt.err (!%p6216_p10)
}
  0x1e   :  { %s6220_s1 = scalar_lea.vmem %s63_s28, 352  ;;  %p6225_p12 = scmp.lt.s32.totalorder %s63_s28, %s63_s28 }
  0x1f   :  { %p6221_p11 = scmp.ne.s32.totalorder %s63_s28, %s6220_s1  ;;  %p6226_p13 = scmp.lt.s32.totalorder %s6220_s1, %s6220_s1 }
  0x21   :  { %p6227_p0 = por %p6226_p13, %p6225_p12 }
  0x23   :  { %p6228_p1 = pnand %p6227_p0, %p6221_p11 }
  0x25   :  { %6231 = shalt.err (!%p6228_p1)
}
  0x26   :  { %65 = dma.hbm_to_vmem [thread:$0]  %s7244_s3, 352, %s63_s28, [#allocation9]  }
  0x27   :  { %s6232_s22 = scalar_lea.hbm %s7246_s5, 4096 }
  0x28   :  { %p6233_p2 = scmp.ne.s32.totalorder %s7246_s5, %s6232_s22  ;;  %p6236_p3 = scmp.lt.u32.totalorder %s6232_s22, %s7246_s5 }
  0x2a   :  { %p6238_p4 = pnand %p6236_p3, %p6233_p2 }
  0x2c   :  { %6241 = shalt.err (!%p6238_p4)
}
  0x2d   :  { %s6242_s11 = scalar_lea.vmem %s84_s30, 4096  ;;  %p6247_p6 = scmp.lt.s32.totalorder %s84_s30, %s84_s30 }
  0x2e   :  { %p6243_p5 = scmp.ne.s32.totalorder %s84_s30, %s6242_s11  ;;  %p6248_p7 = scmp.lt.s32.totalorder %s6242_s11, %s6242_s11 }
  0x30   :  { %p6249_p8 = por %p6248_p7, %p6247_p6 }
  0x32   :  { %p6250_p9 = pnand %p6249_p8, %p6243_p5 }
  0x34   :  { %6253 = shalt.err (!%p6250_p9)
}
  0x35   :  { %89 = dma.hbm_to_vmem [thread:$0]  %s7246_s5, 4096, %s84_s30, [#allocation12], %s6421_s23, %s6421_s23, %s6422_s24  }
  0x36   :  { %s6425_s12 = smov [#allocation2]   ;;  %s6426_s15 = smov [#allocation7]  }
  0x37   :  { %s28_s13 = sshll.u32 %s6425_s12, 4  ;;  %s49_s16 = sshll.u32 %s6426_s15, 4  ;;  %s29_s13 = int_to_ptr.vmem [resolvable:$true] %s28_s13  ;;  %s50_s16 = int_to_ptr.vmem [resolvable:$true] %s49_s16 }
  0x38   :  { %s6254_s1 = scalar_lea.hbm %s7241_s0, 64 }
  0x39   :  { %p6255_p10 = scmp.ne.s32.totalorder %s7241_s0, %s6254_s1  ;;  %p6258_p11 = scmp.lt.u32.totalorder %s6254_s1, %s7241_s0 }
  0x3b   :  { %p6260_p12 = pnand %p6258_p11, %p6255_p10 }
  0x3d   :  { %6263 = shalt.err (!%p6260_p12)
}
  0x3e   :  { %s6264_s5 = scalar_lea.vmem %s29_s13, 64  ;;  %p6269_p0 = scmp.lt.s32.totalorder %s29_s13, %s29_s13 }
  0x3f   :  { %p6265_p13 = scmp.ne.s32.totalorder %s29_s13, %s6264_s5  ;;  %p6270_p1 = scmp.lt.s32.totalorder %s6264_s5, %s6264_s5 }
  0x41   :  { %p6271_p2 = por %p6270_p1, %p6269_p0 }
  0x43   :  { %p6272_p3 = pnand %p6271_p2, %p6265_p13 }
  0x45   :  { %6275 = shalt.err (!%p6272_p3)
}
  0x46   :  { %31 = dma.hbm_to_vmem [thread:$0]  %s7241_s0, 64, %s29_s13, [#allocation3]  }
  0x47   :  { %s6276_s26 = scalar_lea.hbm %s7243_s2, 12288 }
  0x48   :  { %p6277_p4 = scmp.ne.s32.totalorder %s7243_s2, %s6276_s26  ;;  %p6280_p5 = scmp.lt.u32.totalorder %s6276_s26, %s7243_s2 }
  0x4a   :  { %p6282_p6 = pnand %p6280_p5, %p6277_p4 }
  0x4c   :  { %6285 = shalt.err (!%p6282_p6)
}
  0x4d   :  { %s6286_s28 = scalar_lea.vmem %s50_s16, 12288  ;;  %p6291_p8 = scmp.lt.s32.totalorder %s50_s16, %s50_s16 }
  0x4e   :  { %p6287_p7 = scmp.ne.s32.totalorder %s50_s16, %s6286_s28  ;;  %p6292_p9 = scmp.lt.s32.totalorder %s6286_s28, %s6286_s28 }
  0x50   :  { %p6293_p10 = por %p6292_p9, %p6291_p8 }
  0x52   :  { %p6294_p11 = pnand %p6293_p10, %p6287_p7 }
  0x54   :  { %6297 = shalt.err (!%p6294_p11)
}
  0x55   :  { %s6427_s0 = smov 768   ;;  %s6428_s12 = smov 48  }
  0x56   :  { %55 = dma.hbm_to_vmem [thread:$0]  %s7243_s2, 12288, %s50_s16, [#allocation6], %s6427_s0, %s6427_s0, %s6428_s12  }
  0x57   :  { %s6429_s17 = smov [#allocation10]   ;;  %s6298_s19 = scalar_lea.hbm %s7245_s4, 12288 }
  0x58   :  { %s71_s18 = sshll.u32 %s6429_s17, 4  ;;  %p6299_p12 = scmp.ne.s32.totalorder %s7245_s4, %s6298_s19  ;;  %s72_s18 = int_to_ptr.vmem [resolvable:$true] %s71_s18 }
  0x59   :  { %p6302_p13 = scmp.lt.u32.totalorder %s6298_s19, %s7245_s4 }
  0x5b   :  { %p6304_p0 = pnand %p6302_p13, %p6299_p12 }
  0x5d   :  { %6307 = shalt.err (!%p6304_p0)
}
  0x5e   :  { %s6308_s30 = scalar_lea.vmem %s72_s18, 12288  ;;  %p6313_p2 = scmp.lt.s32.totalorder %s72_s18, %s72_s18 }
  0x5f   :  { %p6309_p1 = scmp.ne.s32.totalorder %s72_s18, %s6308_s30  ;;  %p6314_p3 = scmp.lt.s32.totalorder %s6308_s30, %s6308_s30 }
  0x61   :  { %p6315_p4 = por %p6314_p3, %p6313_p2 }
  0x63   :  { %p6316_p5 = pnand %p6315_p4, %p6309_p1 }
  0x65   :  { %6319 = shalt.err (!%p6316_p5)
}
  0x66   :  { %s6430_s2 = smov 192   ;;  %s6431_s16 = smov 12  }
  0x67   :  { %77 = dma.hbm_to_vmem [thread:$0]  %s7245_s4, 12288, %s72_s18, [#allocation9], %s6430_s2, %s6430_s2, %s6431_s16  }
  0x68   :  { %s6432_s26 = smov [#allocation13]   ;;  %s6320_s3 = scalar_lea.hbm %s7247_s6, 24576 }
  0x69   :  { %s95_s27 = sshll.u32 %s6432_s26, 4  ;;  %p6321_p6 = scmp.ne.s32.totalorder %s7247_s6, %s6320_s3  ;;  %s96_s27 = int_to_ptr.vmem [resolvable:$true] %s95_s27 }
  0x6a   :  { %p6324_p7 = scmp.lt.u32.totalorder %s6320_s3, %s7247_s6 }
  0x6c   :  { %p6326_p8 = pnand %p6324_p7, %p6321_p6 }
  0x6e   :  { %6329 = shalt.err (!%p6326_p8)
}
  0x6f   :  { %s6330_s17 = scalar_lea.vmem %s96_s27, 24576  ;;  %p6335_p10 = scmp.lt.s32.totalorder %s96_s27, %s96_s27 }
  0x70   :  { %p6331_p9 = scmp.ne.s32.totalorder %s96_s27, %s6330_s17  ;;  %p6336_p11 = scmp.lt.s32.totalorder %s6330_s17, %s6330_s17 }
  0x72   :  { %p6337_p12 = por %p6336_p11, %p6335_p10 }
  0x74   :  { %p6338_p13 = pnand %p6337_p12, %p6331_p9 }
  0x76   :  { %6341 = shalt.err (!%p6338_p13)
}
  0x77   :  { %s6433_s4 = smov 384   ;;  %s6434_s18 = smov 24  }
  0x78   :  { %101 = dma.hbm_to_vmem [thread:$0]  %s7247_s6, 24576, %s96_s27, [#allocation12], %s6433_s4, %s6433_s4, %s6434_s18  }
  0x79   :  { %6408 = dma.done.wait [#allocation3], 64  }
  0x7a   :  { %6409 = vsyncadd [#allocation3], 4294967232 }
  0x7b   :  { %6410 = dma.done.wait [#allocation6], 12544  }
  0x7c   :  { %6411 = vsyncadd [#allocation6], 4294954752 }
  0x7d   :  { %6412 = dma.done.wait [#allocation9], 12640  }
  0x7e   :  { %6413 = vsyncadd [#allocation9], 4294954656 }
  0x7f   :  { %6414 = dma.done.wait [#allocation12], 28672  }
  0x80   :  { %6415 = vsyncadd [#allocation12], 4294938624  ;;  %v6435_v0 = vmov 0.0   ;;  %vm6436_vm0 = vmmov 0   ;;  %v5594_v1 = vld [vmem:[#allocation5] sm:$0xff]   ;;  %v5595_v2 = vld [vmem:[#allocation5 + $0x8] sm:$0xff]  }
  0x81   :  { %5483 = vmatprep.subr.bf16.mxu0 %v6435_v0  ;;  %5487 = vmatprep.mubr.msk.bf16.mxu0 %vm6436_vm0, %v6435_v0  ;;  %v124_v3 = vld [vmem:[#allocation2] sm:$0xf]  ;;  %v5598_v4 = vld [vmem:[#allocation7 + $0x4] ss:$48 sps:$4 sm:$0xff]   ;;  %v5601_v6 = vld [vmem:[#allocation7 + $0x10] ss:$48 sps:$4 sm:$0xff]  }
  0x82   :  { %5484 = vmatpush3.bf16.msra.mxu0 %v5594_v1  ;;  %v5599_v5 = vld [vmem:[#allocation7 + $0x14] ss:$48 sps:$4 sm:$0xff]   ;;  %v125_v7 = vpack.c.bf16 %v124_v3, %v124_v3  ;;  %v5596_v8 = vld [vmem:[#allocation7] ss:$48 sps:$4 sm:$0xff]   ;;  %vm142_vm1 = vcmask 261120   ;;  %v6437_v39 = vmov 0  }
  0x83   :  { %5485 = vmatprep.subr.bf16.mxu0 %v6435_v0  ;;  %913 = vmatprep.subr.bf16.mxu1 %v5599_v5  ;;  %v5604_v9 = vld [vmem:[#allocation7 + $0x64] ss:$48 sps:$4 sm:$0xff]   ;;  %v5607_v11 = vld [vmem:[#allocation7 + $0x70] ss:$48 sps:$4 sm:$0xff]   ;;  %v5646_v37 = vld [vmem:[#allocation7 + $0xc] ss:$48 sps:$4 sm:$0xff]  }
  0x84   :  { %914 = vmatpush1.bf16.msra.mxu1 %v5601_v6  ;;  %v5605_v10 = vld [vmem:[#allocation7 + $0x74] ss:$48 sps:$4 sm:$0xff]   ;;  %v5602_v13 = vld [vmem:[#allocation7 + $0x60] ss:$48 sps:$4 sm:$0xff]   ;;  %945 = vmatprep.mubr.bf16.mxu1 %v6437_v39  ;;  %v5644_v41 = vld [vmem:[#allocation7 + $0x8] ss:$48 sps:$4 sm:$0xff]  }
  0x85   :  { %915 = vmatprep.subr.bf16.mxu1 %v5605_v10  ;;  %v5611_v12 = vld [vmem:[#allocation7 + $0xd4] ss:$48 sps:$4 sm:$0xff]   ;;  %v5613_v15 = vld [vmem:[#allocation7 + $0xd0] ss:$48 sps:$4 sm:$0xff]   ;;  %v5652_v45 = vld [vmem:[#allocation7 + $0x6c] ss:$48 sps:$4 sm:$0xff]  }
  0x86   :  { %5486 = vmatpush3.bf16.msra.mxu0 %v5595_v2  ;;  %v5610_v14 = vld [vmem:[#allocation7 + $0xc4] ss:$48 sps:$4 sm:$0xff]   ;;  %v5608_v17 = vld [vmem:[#allocation7 + $0xc0] ss:$48 sps:$4 sm:$0xff]   ;;  %v5650_v49 = vld [vmem:[#allocation7 + $0x68] ss:$48 sps:$4 sm:$0xff]  }
  0x87   :  { %831 = vmatprep.subr.bf16.mxu0 %v5598_v4  ;;  %v5617_v16 = vld [vmem:[#allocation7 + $0x134] ss:$48 sps:$4 sm:$0xff]   ;;  %v5619_v19 = vld [vmem:[#allocation7 + $0x130] ss:$48 sps:$4 sm:$0xff]   ;;  %v5658_v51 = vld [vmem:[#allocation7 + $0xcc] ss:$48 sps:$4 sm:$0xff]  }
  0x88   :  { %916 = vmatpush1.bf16.msra.mxu1 %v5607_v11  ;;  %v5616_v18 = vld [vmem:[#allocation7 + $0x124] ss:$48 sps:$4 sm:$0xff]   ;;  %v5614_v21 = vld [vmem:[#allocation7 + $0x120] ss:$48 sps:$4 sm:$0xff]   ;;  %v5656_v53 = vld [vmem:[#allocation7 + $0xc8] ss:$48 sps:$4 sm:$0xff]  }
  0x89   :  { %5488 = vmatmul.mubr.msk.bf16.vlgmr.msra.gmra.mrb[0].mxu0 %vm142_vm1, %v125_v7  ;;  %917 = vmatprep.subr.bf16.mxu1 %v5611_v12  ;;  %v5623_v20 = vld [vmem:[#allocation7 + $0x194] ss:$48 sps:$4 sm:$0xff]   ;;  %v5625_v23 = vld [vmem:[#allocation7 + $0x190] ss:$48 sps:$4 sm:$0xff]   ;;  %v5664_v55 = vld [vmem:[#allocation7 + $0x12c] ss:$48 sps:$4 sm:$0xff]  }
  0x8a   :  { %832 = vmatpush1.bf16.msra.mxu0 %v5596_v8  ;;  %v5622_v22 = vld [vmem:[#allocation7 + $0x184] ss:$48 sps:$4 sm:$0xff]   ;;  %v5620_v25 = vld [vmem:[#allocation7 + $0x180] ss:$48 sps:$4 sm:$0xff]   ;;  %863 = vmatprep.mubr.bf16.mxu0 %v6437_v39  ;;  %v5662_v57 = vld [vmem:[#allocation7 + $0x128] ss:$48 sps:$4 sm:$0xff]  }
  0x8b   :  { %833 = vmatprep.subr.bf16.mxu0 %v5604_v9  ;;  %v5629_v24 = vld [vmem:[#allocation7 + $0x1f4] ss:$48 sps:$4 sm:$0xff]   ;;  %v5631_v27 = vld [vmem:[#allocation7 + $0x1f0] ss:$48 sps:$4 sm:$0xff]   ;;  %v5670_v59 = vld [vmem:[#allocation7 + $0x18c] ss:$48 sps:$4 sm:$0xff]  }
  0x8c   :  { %918 = vmatpush1.bf16.msra.mxu1 %v5613_v15  ;;  %v5628_v26 = vld [vmem:[#allocation7 + $0x1e4] ss:$48 sps:$4 sm:$0xff]   ;;  %v5626_v29 = vld [vmem:[#allocation7 + $0x1e0] ss:$48 sps:$4 sm:$0xff]   ;;  %v5668_v61 = vld [vmem:[#allocation7 + $0x188] ss:$48 sps:$4 sm:$0xff]  }
  0x8d   :  { %919 = vmatprep.subr.bf16.mxu1 %v5617_v16  ;;  %v5635_v28 = vld [vmem:[#allocation7 + $0x254] ss:$48 sps:$4 sm:$0xff]   ;;  %v5637_v31 = vld [vmem:[#allocation7 + $0x250] ss:$48 sps:$4 sm:$0xff]   ;;  %v5676_v63 = vld [vmem:[#allocation7 + $0x1ec] ss:$48 sps:$4 sm:$0xff]  }
  0x8e   :  { %834 = vmatpush1.bf16.msra.mxu0 %v5602_v13  ;;  %v5634_v30 = vld [vmem:[#allocation7 + $0x244] ss:$48 sps:$4 sm:$0xff]   ;;  %v5632_v33 = vld [vmem:[#allocation7 + $0x240] ss:$48 sps:$4 sm:$0xff]   ;;  %v5674_v1 = vld [vmem:[#allocation7 + $0x1e8] ss:$48 sps:$4 sm:$0xff]  }
  0x8f   :  { %835 = vmatprep.subr.bf16.mxu0 %v5610_v14  ;;  %v5641_v32 = vld [vmem:[#allocation7 + $0x2b4] ss:$48 sps:$4 sm:$0xff]   ;;  %v5643_v35 = vld [vmem:[#allocation7 + $0x2b0] ss:$48 sps:$4 sm:$0xff]   ;;  %v5682_v3 = vld [vmem:[#allocation7 + $0x24c] ss:$48 sps:$4 sm:$0xff]  }
  0x90   :  { %920 = vmatpush1.bf16.msra.mxu1 %v5619_v19  ;;  %v5640_v34 = vld [vmem:[#allocation7 + $0x2a4] ss:$48 sps:$4 sm:$0xff]   ;;  %v5638_v36 = vld [vmem:[#allocation7 + $0x2a0] ss:$48 sps:$4 sm:$0xff]   ;;  %v5680_v5 = vld [vmem:[#allocation7 + $0x248] ss:$48 sps:$4 sm:$0xff]  }
  0x91   :  { %921 = vmatprep.subr.bf16.mxu1 %v5623_v20  ;;  %v5649_v38 = vld [vmem:[#allocation7 + $0x24] ss:$48 sps:$4 sm:$0xff]   ;;  %v5647_v42 = vld [vmem:[#allocation7 + $0x20] ss:$48 sps:$4 sm:$0xff]   ;;  %v5688_v7 = vld [vmem:[#allocation7 + $0x2ac] ss:$48 sps:$4 sm:$0xff]  }
  0x92   :  { %836 = vmatpush1.bf16.msra.mxu0 %v5608_v17  ;;  %v5655_v46 = vld [vmem:[#allocation7 + $0x84] ss:$48 sps:$4 sm:$0xff]   ;;  %v5653_v50 = vld [vmem:[#allocation7 + $0x80] ss:$48 sps:$4 sm:$0xff]   ;;  %v5686_v9 = vld [vmem:[#allocation7 + $0x2a8] ss:$48 sps:$4 sm:$0xff]  }
  0x93   :  { %837 = vmatprep.subr.bf16.mxu0 %v5616_v18  ;;  %v5661_v52 = vld [vmem:[#allocation7 + $0xe4] ss:$48 sps:$4 sm:$0xff]   ;;  %v5659_v54 = vld [vmem:[#allocation7 + $0xe0] ss:$48 sps:$4 sm:$0xff]   ;;  %v5694_v11 = vld [vmem:[#allocation7 + $0x1c] ss:$48 sps:$4 sm:$0xff]  }
  0x94   :  { %922 = vmatpush1.bf16.msra.mxu1 %v5625_v23  ;;  %v5667_v56 = vld [vmem:[#allocation7 + $0x144] ss:$48 sps:$4 sm:$0xff]   ;;  %v5665_v58 = vld [vmem:[#allocation7 + $0x140] ss:$48 sps:$4 sm:$0xff]   ;;  %v5692_v13 = vld [vmem:[#allocation7 + $0x18] ss:$48 sps:$4 sm:$0xff]  }
  0x95   :  { %923 = vmatprep.subr.bf16.mxu1 %v5629_v24  ;;  %v5673_v60 = vld [vmem:[#allocation7 + $0x1a4] ss:$48 sps:$4 sm:$0xff]   ;;  %v5671_v62 = vld [vmem:[#allocation7 + $0x1a0] ss:$48 sps:$4 sm:$0xff]   ;;  %v5697_v14 = vld [vmem:[#allocation7 + $0x7c] ss:$48 sps:$4 sm:$0xff]  }
  0x96   :  { %838 = vmatpush1.bf16.msra.mxu0 %v5614_v21  ;;  %v5679_v0 = vld [vmem:[#allocation7 + $0x204] ss:$48 sps:$4 sm:$0xff]   ;;  %v5677_v2 = vld [vmem:[#allocation7 + $0x200] ss:$48 sps:$4 sm:$0xff]   ;;  %v5695_v17 = vld [vmem:[#allocation7 + $0x78] ss:$48 sps:$4 sm:$0xff]  }
  0x97   :  { %839 = vmatprep.subr.bf16.mxu0 %v5622_v22  ;;  %v5685_v4 = vld [vmem:[#allocation7 + $0x264] ss:$48 sps:$4 sm:$0xff]   ;;  %v5683_v6 = vld [vmem:[#allocation7 + $0x260] ss:$48 sps:$4 sm:$0xff]   ;;  %v5700_v18 = vld [vmem:[#allocation7 + $0xdc] ss:$48 sps:$4 sm:$0xff]  }
  0x98   :  { %924 = vmatpush1.bf16.msra.mxu1 %v5631_v27  ;;  %v5691_v8 = vld [vmem:[#allocation7 + $0x2c4] ss:$48 sps:$4 sm:$0xff]   ;;  %v5689_v10 = vld [vmem:[#allocation7 + $0x2c0] ss:$48 sps:$4 sm:$0xff]   ;;  %v5698_v21 = vld [vmem:[#allocation7 + $0xd8] ss:$48 sps:$4 sm:$0xff]  }
  0x99   :  { %925 = vmatprep.subr.bf16.mxu1 %v5635_v28  ;;  %v5742_v12 = vld [vmem:[#allocation10 + $0x4] ss:$12 sps:$4 sm:$0xff]   ;;  %v5740_v15 = vld [vmem:[#allocation10] ss:$12 sps:$4 sm:$0xff]   ;;  %v5745_v16 = vld [vmem:[#allocation10 + $0x1c] ss:$12 sps:$4 sm:$0xff]  }
  0x9a   :  { %840 = vmatpush1.bf16.msra.mxu0 %v5620_v25  ;;  %v5743_v19 = vld [vmem:[#allocation10 + $0x18] ss:$12 sps:$4 sm:$0xff]   ;;  %v5748_v20 = vld [vmem:[#allocation10 + $0x34] ss:$12 sps:$4 sm:$0xff]   ;;  %v5746_v23 = vld [vmem:[#allocation10 + $0x30] ss:$12 sps:$4 sm:$0xff]  }
  0x9b   :  { %841 = vmatprep.subr.bf16.mxu0 %v5628_v26  ;;  %v5703_v22 = vld [vmem:[#allocation7 + $0x13c] ss:$48 sps:$4 sm:$0xff]   ;;  %v5701_v25 = vld [vmem:[#allocation7 + $0x138] ss:$48 sps:$4 sm:$0xff]   ;;  %s6438_s6 = smov 112   ;;  %s6439_s19 = smov 120  }
  0x9c   :  { %926 = vmatpush1.bf16.msra.mxu1 %v5637_v31  ;;  %v5751_v24 = vld [vmem:[#allocation10 + $0x4c] ss:$12 sps:$4 sm:$0xff]   ;;  %v5749_v27 = vld [vmem:[#allocation10 + $0x48] ss:$12 sps:$4 sm:$0xff]   ;;  %v5754_v28 = vld [vmem:[#allocation10 + $0x64] ss:$12 sps:$4 sm:$0xff]  }
  0x9d   :  { %927 = vmatprep.subr.bf16.mxu1 %v5641_v32  ;;  %v5706_v26 = vld [vmem:[#allocation7 + $0x19c] ss:$48 sps:$4 sm:$0xff]   ;;  %v5752_v31 = vld [vmem:[#allocation10 + $0x60] ss:$12 sps:$4 sm:$0xff]   ;;  %s6440_s20 = smov 96   ;;  %s6441_s21 = smov 104  }
  0x9e   :  { %842 = vmatpush1.bf16.msra.mxu0 %v5626_v29  ;;  %v5704_v29 = vld [vmem:[#allocation7 + $0x198] ss:$48 sps:$4 sm:$0xff]   ;;  %v5757_v32 = vld [vmem:[#allocation10 + $0x7c] ss:$12 sps:$4 sm:$0xff]   ;;  %s6442_s5 = smov 80   ;;  %s6443_s24 = smov 88  }
  0x9f   :  { %843 = vmatprep.subr.bf16.mxu0 %v5634_v30  ;;  %v5709_v30 = vld [vmem:[#allocation7 + $0x1fc] ss:$48 sps:$4 sm:$0xff]   ;;  %s6444_s30 = smov 72   ;;  %s6445_s2 = smov 56   ;;  %vm4533_vm2 = vcmask 64512   ;;  %vm4546_vm3 = vcmask 1043456  }
  0xa0   :  { %928 = vmatpush1.bf16.msra.mxu1 %v5643_v35  ;;  %v5755_v35 = vld [vmem:[#allocation10 + $0x78] ss:$12 sps:$4 sm:$0xff]   ;;  %s6446_s16 = smov 32   ;;  %s6447_s22 = smov 40  }
  0xa1   :  { %995 = vmatprep.subr.bf16.mxu1 %v5649_v38  ;;  %v5715_v38 = vld [vmem:[#allocation7 + $0x2bc] ss:$48 sps:$4 sm:$0xff]   ;;  %s6448_s25 = smov 16   ;;  %s6449_s26 = smov 8  }
  0xa2   :  { %844 = vmatpush1.bf16.msra.mxu0 %v5632_v33  ;;  %v5707_v33 = vld [vmem:[#allocation7 + $0x1f8] ss:$48 sps:$4 sm:$0xff]   ;;  %s6453_s27 = smov [#allocation14]  }
  0xa3   :  { %845 = vmatprep.subr.bf16.mxu0 %v5640_v34  ;;  %v5712_v34 = vld [vmem:[#allocation7 + $0x25c] ss:$48 sps:$4 sm:$0xff]   ;;  %s4893_s29 = sshll.u32 %s6453_s27, 4  ;;  %s4894_s29 = int_to_ptr.vmem [resolvable:$true] %s4893_s29 }
  0xa6   :  { %846 = vmatpush1.bf16.msra.mxu0 %v5638_v36  ;;  %v5760_v36 = vld [vmem:[#allocation10 + $0x94] ss:$12 sps:$4 sm:$0xff]  }
  0xa7   :  { %872 = vmatprep.subr.bf16.mxu0 %v5646_v37  ;;  %v5710_v37 = vld [vmem:[#allocation7 + $0x258] ss:$48 sps:$4 sm:$0xff]  }
 0x15c   :  { %v180_v40 = vpop.f32.mrb[0].mxu0 }
 0x15d   :  { %186 = vst [vmem:[#allocation17] sm:$0xf] %v180_v40  ;;  %v6605_v43 = vpack.c.bf16 %v180_v40, %v180_v40  ;;  %v5489_v44 = vpop.f32.mrb[1].mxu0  ;;  %v5758_v40 = vld [vmem:[#allocation10 + $0x90] ss:$12 sps:$4 sm:$0xff]  }
 0x15e   :  { %v183_v47 = vpop.f32.mrb[2].mxu0  ;;  %v5718_v44 = vld [vmem:[#allocation7 + $0x2c] ss:$48 sps:$4 sm:$0xff]  }
 0x15f   :  { %v5490_v48 = vpop.f32.mrb[3].mxu0  ;;  %864 = vmatmul.mubr.bf16.vlgmr.msra.gmra.mrb[4].mxu0 %v6605_v43  ;;  %946 = vmatmul.mubr.bf16.vlgmr.msra.gmra.mrb[0].mxu1 %v6605_v43  ;;  %v5716_v47 = vld [vmem:[#allocation7 + $0x28] ss:$48 sps:$4 sm:$0xff]  }
 0x160   :  { %873 = vmatpush1.bf16.msra.mxu0 %v5644_v41  ;;  %996 = vmatpush1.bf16.msra.mxu1 %v5647_v42  ;;  %v5763_v41 = vld [vmem:[#allocation10 + $0xac] ss:$12 sps:$4 sm:$0xff]   ;;  %v5713_v42 = vld [vmem:[#allocation7 + $0x2b8] ss:$48 sps:$4 sm:$0xff]  }
 0x161   :  { %874 = vmatprep.subr.bf16.mxu0 %v5652_v45  ;;  %997 = vmatprep.subr.bf16.mxu1 %v5655_v46  ;;  %v5761_v45 = vld [vmem:[#allocation10 + $0xa8] ss:$12 sps:$4 sm:$0xff]   ;;  %v5766_v46 = vld [vmem:[#allocation10 + $0xc4] ss:$12 sps:$4 sm:$0xff]  }
 0x162   :  { %904 = vmatprep.mubr.bf16.mxu0 %v6437_v39  ;;  %1027 = vmatprep.mubr.bf16.mxu1 %v6437_v39  ;;  %v5721_v48 = vld [vmem:[#allocation7 + $0x8c] ss:$48 sps:$4 sm:$0xff]  }
 0x164   :  { %875 = vmatpush1.bf16.msra.mxu0 %v5650_v49  ;;  %998 = vmatpush1.bf16.msra.mxu1 %v5653_v50  ;;  %v5764_v49 = vld [vmem:[#allocation10 + $0xc0] ss:$12 sps:$4 sm:$0xff]   ;;  %v5771_v50 = vld [vmem:[#allocation10 + $0xdc] ss:$12 sps:$4 sm:$0xff]  }
 0x165   :  { %876 = vmatprep.subr.bf16.mxu0 %v5658_v51  ;;  %999 = vmatprep.subr.bf16.mxu1 %v5661_v52  ;;  %v5719_v51 = vld [vmem:[#allocation7 + $0x88] ss:$48 sps:$4 sm:$0xff]   ;;  %v5724_v52 = vld [vmem:[#allocation7 + $0xec] ss:$48 sps:$4 sm:$0xff]  }
 0x168   :  { %877 = vmatpush1.bf16.msra.mxu0 %v5656_v53  ;;  %1000 = vmatpush1.bf16.msra.mxu1 %v5659_v54  ;;  %v5769_v53 = vld [vmem:[#allocation10 + $0xd8] ss:$12 sps:$4 sm:$0xff]   ;;  %v5776_v54 = vld [vmem:[#allocation10 + $0xf4] ss:$12 sps:$4 sm:$0xff]  }
 0x169   :  { %878 = vmatprep.subr.bf16.mxu0 %v5664_v55  ;;  %1001 = vmatprep.subr.bf16.mxu1 %v5667_v56  ;;  %v5722_v55 = vld [vmem:[#allocation7 + $0xe8] ss:$48 sps:$4 sm:$0xff]   ;;  %v5727_v56 = vld [vmem:[#allocation7 + $0x14c] ss:$48 sps:$4 sm:$0xff]  }
 0x16c   :  { %879 = vmatpush1.bf16.msra.mxu0 %v5662_v57  ;;  %1002 = vmatpush1.bf16.msra.mxu1 %v5665_v58  ;;  %v5774_v57 = vld [vmem:[#allocation10 + $0xf0] ss:$12 sps:$4 sm:$0xff]   ;;  %v5781_v58 = vld [vmem:[#allocation10 + $0x10c] ss:$12 sps:$4 sm:$0xff]  }
 0x16d   :  { %880 = vmatprep.subr.bf16.mxu0 %v5670_v59  ;;  %1003 = vmatprep.subr.bf16.mxu1 %v5673_v60  ;;  %v5725_v59 = vld [vmem:[#allocation7 + $0x148] ss:$48 sps:$4 sm:$0xff]   ;;  %v5730_v60 = vld [vmem:[#allocation7 + $0x1ac] ss:$48 sps:$4 sm:$0xff]  }
 0x170   :  { %881 = vmatpush1.bf16.msra.mxu0 %v5668_v61  ;;  %1004 = vmatpush1.bf16.msra.mxu1 %v5671_v62  ;;  %v5786_v61 = vld [vmem:[#allocation10 + $0x124] ss:$12 sps:$4 sm:$0xff]  }
 0x171   :  { %882 = vmatprep.subr.bf16.mxu0 %v5676_v63  ;;  %1005 = vmatprep.subr.bf16.mxu1 %v5679_v0  ;;  %v5728_v62 = vld [vmem:[#allocation7 + $0x1a8] ss:$48 sps:$4 sm:$0xff]   ;;  %v5733_v63 = vld [vmem:[#allocation7 + $0x20c] ss:$48 sps:$4 sm:$0xff]  }
 0x172   :  { %v5784_v0 = vld [vmem:[#allocation10 + $0x120] ss:$12 sps:$4 sm:$0xff]  }
 0x174   :  { %883 = vmatpush1.bf16.msra.mxu0 %v5674_v1  ;;  %1006 = vmatpush1.bf16.msra.mxu1 %v5677_v2  ;;  %v5791_v1 = vld [vmem:[#allocation10 + $0x13c] ss:$12 sps:$4 sm:$0xff]   ;;  %v5731_v2 = vld [vmem:[#allocation7 + $0x208] ss:$48 sps:$4 sm:$0xff]  }
 0x175   :  { %884 = vmatprep.subr.bf16.mxu0 %v5682_v3  ;;  %1007 = vmatprep.subr.bf16.mxu1 %v5685_v4  ;;  %v5736_v3 = vld [vmem:[#allocation7 + $0x26c] ss:$48 sps:$4 sm:$0xff]  }
 0x176   :  { %v5789_v4 = vld [vmem:[#allocation10 + $0x138] ss:$12 sps:$4 sm:$0xff]  }
 0x178   :  { %885 = vmatpush1.bf16.msra.mxu0 %v5680_v5  ;;  %1008 = vmatpush1.bf16.msra.mxu1 %v5683_v6  ;;  %v5796_v5 = vld [vmem:[#allocation10 + $0x154] ss:$12 sps:$4 sm:$0xff]  }
 0x179   :  { %886 = vmatprep.subr.bf16.mxu0 %v5688_v7  ;;  %1009 = vmatprep.subr.bf16.mxu1 %v5691_v8  ;;  %v5734_v6 = vld [vmem:[#allocation7 + $0x268] ss:$48 sps:$4 sm:$0xff]   ;;  %v5739_v7 = vld [vmem:[#allocation7 + $0x2cc] ss:$48 sps:$4 sm:$0xff]  }
 0x17a   :  { %v5794_v8 = vld [vmem:[#allocation10 + $0x150] ss:$12 sps:$4 sm:$0xff]  }
 0x17c   :  { %887 = vmatpush1.bf16.msra.mxu0 %v5686_v9  ;;  %1010 = vmatpush1.bf16.msra.mxu1 %v5689_v10  ;;  %v5801_v9 = vld [vmem:[#allocation10 + $0x16c] ss:$12 sps:$4 sm:$0xff]   ;;  %v5737_v10 = vld [vmem:[#allocation7 + $0x2c8] ss:$48 sps:$4 sm:$0xff]  }
 0x17d   :  { %954 = vmatprep.subr.bf16.mxu0 %v5694_v11  ;;  %1757 = vmatprep.subr.bf16.mxu1 %v5742_v12  ;;  %v5767_v11 = vld [vmem:[#allocation10 + $0xc8] ss:$12 sps:$4 sm:$0xff]  }
 0x17e   :  { %v5799_v12 = vld [vmem:[#allocation10 + $0x168] ss:$12 sps:$4 sm:$0xff]  }
 0x17f   :  { %905 = vmatmul.mubr.bf16.vlgmr.msra.gmra.mrb[8].mxu0 %v6605_v43  ;;  %1028 = vmatmul.mubr.bf16.vlgmr.msra.gmra.mrb[4].mxu1 %v6605_v43 }
 0x180   :  { %955 = vmatpush1.bf16.msra.mxu0 %v5692_v13  ;;  %986 = vmatprep.mubr.bf16.mxu0 %v6437_v39  ;;  %v5806_v13 = vld [vmem:[#allocation10 + $0x184] ss:$12 sps:$4 sm:$0xff]  }
 0x181   :  { %956 = vmatprep.subr.bf16.mxu0 %v5697_v14  ;;  %1758 = vmatpush1.bf16.msra.mxu1 %v5740_v15  ;;  %v5768_v14 = vld [vmem:[#allocation10 + $0x8] ss:$12 sps:$4 sm:$0xff]   ;;  %v5772_v15 = vld [vmem:[#allocation10 + $0xe0] ss:$12 sps:$4 sm:$0xff]  }
 0x182   :  { %1759 = vmatprep.subr.bf16.mxu1 %v5745_v16  ;;  %v5773_v16 = vld [vmem:[#allocation10 + $0x20] ss:$12 sps:$4 sm:$0xff]  }
 0x184   :  { %957 = vmatpush1.bf16.msra.mxu0 %v5695_v17  ;;  %v5777_v17 = vld [vmem:[#allocation10 + $0xf8] ss:$12 sps:$4 sm:$0xff]  }
 0x185   :  { %958 = vmatprep.subr.bf16.mxu0 %v5700_v18  ;;  %1760 = vmatpush1.bf16.msra.mxu1 %v5743_v19  ;;  %v5778_v18 = vld [vmem:[#allocation10 + $0x38] ss:$12 sps:$4 sm:$0xff]   ;;  %v5782_v19 = vld [vmem:[#allocation10 + $0x110] ss:$12 sps:$4 sm:$0xff]  }
 0x186   :  { %1761 = vmatprep.subr.bf16.mxu1 %v5748_v20  ;;  %v5783_v20 = vld [vmem:[#allocation10 + $0x50] ss:$12 sps:$4 sm:$0xff]  }
 0x188   :  { %959 = vmatpush1.bf16.msra.mxu0 %v5698_v21  ;;  %v5787_v21 = vld [vmem:[#allocation10 + $0x128] ss:$12 sps:$4 sm:$0xff]  }
 0x189   :  { %960 = vmatprep.subr.bf16.mxu0 %v5703_v22  ;;  %1762 = vmatpush1.bf16.msra.mxu1 %v5746_v23  ;;  %v5788_v22 = vld [vmem:[#allocation10 + $0x68] ss:$12 sps:$4 sm:$0xff]   ;;  %v5792_v23 = vld [vmem:[#allocation10 + $0x140] ss:$12 sps:$4 sm:$0xff]  }
 0x18a   :  { %1763 = vmatprep.subr.bf16.mxu1 %v5751_v24  ;;  %v5793_v24 = vld [vmem:[#allocation10 + $0x80] ss:$12 sps:$4 sm:$0xff]  }
 0x18c   :  { %961 = vmatpush1.bf16.msra.mxu0 %v5701_v25  ;;  %v5798_v25 = vld [vmem:[#allocation10 + $0x98] ss:$12 sps:$4 sm:$0xff]  }
 0x18d   :  { %962 = vmatprep.subr.bf16.mxu0 %v5706_v26  ;;  %1764 = vmatpush1.bf16.msra.mxu1 %v5749_v27  ;;  %v5802_v26 = vld [vmem:[#allocation10 + $0x170] ss:$12 sps:$4 sm:$0xff]  }
 0x18e   :  { %1765 = vmatprep.subr.bf16.mxu1 %v5754_v28  ;;  %v5803_v27 = vld [vmem:[#allocation10 + $0xb0] ss:$12 sps:$4 sm:$0xff]   ;;  %v5807_v28 = vld [vmem:[#allocation10 + $0x248] ss:$12 sps:$4 sm:$0xff]  }
 0x190   :  { %963 = vmatpush1.bf16.msra.mxu0 %v5704_v29  ;;  %v291_v29 = vlaneseq }
 0x191   :  { %964 = vmatprep.subr.bf16.mxu0 %v5709_v30  ;;  %1766 = vmatpush1.bf16.msra.mxu1 %v5752_v31 }
 0x192   :  { %1767 = vmatprep.subr.bf16.mxu1 %v5757_v32  ;;  %v6617_v30 = vshrl.u32 %v291_v29, 7  ;;  %v6622_v32 = vld [vmem:[#allocation8] sm:$0xff] }
 0x193   :  { %v5839_v29 = vld [vmem:[#allocation10 + $0x228] ss:$12 sps:$4 sm:$0xff]  }
 0x194   :  { %965 = vmatpush1.bf16.msra.mxu0 %v5707_v33  ;;  %v6620_v31 = vsub.s32 0, %v6617_v30  ;;  %v6625_v33 = vsub.s32 1, %v6617_v30 }
 0x195   :  { %966 = vmatprep.subr.bf16.mxu0 %v5712_v34  ;;  %1768 = vmatpush1.bf16.msra.mxu1 %v5755_v35 }
 0x196   :  { %1769 = vmatprep.subr.bf16.mxu1 %v5760_v36  ;;  %v294_v34 = vrot.slane %v6622_v32, %v6620_v31  ;;  %v298_v35 = vrot.slane %v6622_v32, %v6625_v33 }
 0x198   :  { %967 = vmatpush1.bf16.msra.mxu0 %v5710_v37 }
 0x199   :  { %968 = vmatprep.subr.bf16.mxu0 %v5715_v38  ;;  %1770 = vmatpush1.bf16.msra.mxu1 %v5758_v40 }
 0x19a   :  { %1771 = vmatprep.subr.bf16.mxu1 %v5763_v41 }
 0x19c   :  { %969 = vmatpush1.bf16.msra.mxu0 %v5713_v42 }
 0x19d   :  { %1036 = vmatprep.subr.bf16.mxu0 %v5718_v44  ;;  %1772 = vmatpush1.bf16.msra.mxu1 %v5761_v45 }
 0x19e   :  { %1773 = vmatprep.subr.bf16.mxu1 %v5766_v46 }
 0x19f   :  { %987 = vmatmul.mubr.bf16.vlgmr.msra.gmra.mrb[12].mxu0 %v6605_v43 }
 0x1a0   :  { %1037 = vmatpush1.bf16.msra.mxu0 %v5716_v47  ;;  %1068 = vmatprep.mubr.bf16.mxu0 %v6437_v39  ;;  %v5779_v39 = vld [vmem:[#allocation10 + $0x108] ss:$12 sps:$4 sm:$0xff]  }
 0x1a1   :  { %1038 = vmatprep.subr.bf16.mxu0 %v5721_v48  ;;  %1774 = vmatpush1.bf16.msra.mxu1 %v5764_v49 }
 0x1a2   :  { %1775 = vmatprep.subr.bf16.mxu1 %v5771_v50 }
 0x1a4   :  { %1039 = vmatpush1.bf16.msra.mxu0 %v5719_v51  ;;  %v5804_v51 = vld [vmem:[#allocation10 + $0x180] ss:$12 sps:$4 sm:$0xff]  }
 0x1a5   :  { %1040 = vmatprep.subr.bf16.mxu0 %v5724_v52  ;;  %1776 = vmatpush1.bf16.msra.mxu1 %v5769_v53  ;;  %v5808_v52 = vld [vmem:[#allocation10 + $0x188] ss:$12 sps:$4 sm:$0xff]  }
 0x1a6   :  { %1777 = vmatprep.subr.bf16.mxu1 %v5776_v54  ;;  %v5811_v54 = vld [vmem:[#allocation10 + $0x19c] ss:$12 sps:$4 sm:$0xff]  }
 0x1a8   :  { %1041 = vmatpush1.bf16.msra.mxu0 %v5722_v55  ;;  %v5812_v55 = vld [vmem:[#allocation10 + $0x260] ss:$12 sps:$4 sm:$0xff]  }
 0x1a9   :  { %1042 = vmatprep.subr.bf16.mxu0 %v5727_v56  ;;  %1778 = vmatpush1.bf16.msra.mxu1 %v5774_v57  ;;  %v5809_v56 = vld [vmem:[#allocation10 + $0x198] ss:$12 sps:$4 sm:$0xff]   ;;  %v5813_v57 = vld [vmem:[#allocation10 + $0x1a0] ss:$12 sps:$4 sm:$0xff]  }
 0x1aa   :  { %1779 = vmatprep.subr.bf16.mxu1 %v5781_v58  ;;  %v5816_v58 = vld [vmem:[#allocation10 + $0x1b4] ss:$12 sps:$4 sm:$0xff]  }
 0x1ac   :  { %1043 = vmatpush1.bf16.msra.mxu0 %v5725_v59  ;;  %v5817_v59 = vld [vmem:[#allocation10 + $0x278] ss:$12 sps:$4 sm:$0xff]  }
 0x1ad   :  { %1044 = vmatprep.subr.bf16.mxu0 %v5730_v60  ;;  %1780 = vmatpush1.bf16.msra.mxu1 %v5779_v39  ;;  %v5814_v60 = vld [vmem:[#allocation10 + $0x1b0] ss:$12 sps:$4 sm:$0xff]   ;;  %v5818_v39 = vld [vmem:[#allocation10 + $0x1b8] ss:$12 sps:$4 sm:$0xff]  }
 0x1ae   :  { %1781 = vmatprep.subr.bf16.mxu1 %v5786_v61  ;;  %v5821_v61 = vld [vmem:[#allocation10 + $0x1cc] ss:$12 sps:$4 sm:$0xff]  }
 0x1b0   :  { %1045 = vmatpush1.bf16.msra.mxu0 %v5728_v62  ;;  %v5822_v62 = vld [vmem:[#allocation10 + $0x290] ss:$12 sps:$4 sm:$0xff]  }
 0x1b1   :  { %1046 = vmatprep.subr.bf16.mxu0 %v5733_v63  ;;  %1782 = vmatpush1.bf16.msra.mxu1 %v5784_v0  ;;  %v5819_v63 = vld [vmem:[#allocation10 + $0x1c8] ss:$12 sps:$4 sm:$0xff]   ;;  %v5823_v0 = vld [vmem:[#allocation10 + $0x1d0] ss:$12 sps:$4 sm:$0xff]  }
 0x1b2   :  { %1783 = vmatprep.subr.bf16.mxu1 %v5791_v1  ;;  %v5826_v1 = vld [vmem:[#allocation10 + $0x1e4] ss:$12 sps:$4 sm:$0xff]  }
 0x1b4   :  { %1047 = vmatpush1.bf16.msra.mxu0 %v5731_v2  ;;  %v5827_v2 = vld [vmem:[#allocation10 + $0x2a8] ss:$12 sps:$4 sm:$0xff]  }
 0x1b5   :  { %1048 = vmatprep.subr.bf16.mxu0 %v5736_v3  ;;  %1784 = vmatpush1.bf16.msra.mxu1 %v5789_v4  ;;  %v5824_v3 = vld [vmem:[#allocation10 + $0x1e0] ss:$12 sps:$4 sm:$0xff]   ;;  %v5828_v4 = vld [vmem:[#allocation10 + $0x1e8] ss:$12 sps:$4 sm:$0xff]  }
 0x1b6   :  { %1785 = vmatprep.subr.bf16.mxu1 %v5796_v5  ;;  %v5831_v5 = vld [vmem:[#allocation10 + $0x1fc] ss:$12 sps:$4 sm:$0xff]  }
 0x1b8   :  { %1049 = vmatpush1.bf16.msra.mxu0 %v5734_v6  ;;  %v5832_v6 = vld [vmem:[#allocation10 + $0x2c0] ss:$12 sps:$4 sm:$0xff]  }
 0x1b9   :  { %1050 = vmatprep.subr.bf16.mxu0 %v5739_v7  ;;  %1786 = vmatpush1.bf16.msra.mxu1 %v5794_v8  ;;  %v313_v7 = vsub.s32 5, %v6617_v30  ;;  %v6637_v8 = vsub.s32 2, %v6617_v30 }
 0x1ba   :  { %1787 = vmatprep.subr.bf16.mxu1 %v5801_v9  ;;  %v5829_v9 = vld [vmem:[#allocation10 + $0x1f8] ss:$12 sps:$4 sm:$0xff]  }
 0x1bc   :  { %1051 = vmatpush1.bf16.msra.mxu0 %v5737_v10  ;;  %v5833_v10 = vld [vmem:[#allocation10 + $0x200] ss:$12 sps:$4 sm:$0xff]  }
 0x1bd   :  { %5375 = vmatprep.subr.bf16.mxu0 %v5767_v11  ;;  %1788 = vmatpush1.bf16.msra.mxu1 %v5799_v12  ;;  %v6640_v11 = vsub.s32 3, %v6617_v30  ;;  %v5836_v12 = vld [vmem:[#allocation10 + $0x214] ss:$12 sps:$4 sm:$0xff]  }
 0x1be   :  { %1798 = vmatprep.subr.bf16.mxu1 %v5806_v13  ;;  %v5837_v13 = vld [vmem:[#allocation10 + $0x2d8] ss:$12 sps:$4 sm:$0xff]  }
 0x1bf   :  { %1069 = vmatmul.mubr.bf16.vlgmr.msra.gmra.mrb[16].mxu0 %v6605_v43  ;;  %v5797_v43 = vld [vmem:[#allocation10 + $0x158] ss:$12 sps:$4 sm:$0xff]  }
 0x1c0   :  { %5376 = vmatpush3.bf16.msra.mxu0 %v5768_v14  ;;  %v314_v14 = vrot.slane %v6622_v32, %v313_v7 }
 0x1c1   :  { %5377 = vmatprep.subr.bf16.mxu0 %v5772_v15  ;;  %v302_v15 = vrot.slane %v6622_v32, %v6637_v8 }
 0x1c4   :  { %5378 = vmatpush3.bf16.msra.mxu0 %v5773_v16  ;;  %v306_v16 = vrot.slane %v6622_v32, %v6640_v11 }
 0x1c5   :  { %5379 = vmatprep.subr.bf16.mxu0 %v5777_v17  ;;  %v5834_v17 = vld [vmem:[#allocation10 + $0x210] ss:$12 sps:$4 sm:$0xff]  }
 0x1c8   :  { %5380 = vmatpush3.bf16.msra.mxu0 %v5778_v18  ;;  %v5838_v18 = vld [vmem:[#allocation10 + $0x218] ss:$12 sps:$4 sm:$0xff]  }
 0x1c9   :  { %5381 = vmatprep.subr.bf16.mxu0 %v5782_v19  ;;  %v5841_v19 = vld [vmem:[#allocation10 + $0x22c] ss:$12 sps:$4 sm:$0xff]  }
 0x1cc   :  { %5382 = vmatpush3.bf16.msra.mxu0 %v5783_v20  ;;  %v5842_v20 = vld [vmem:[#allocation10 + $0x2f0] ss:$12 sps:$4 sm:$0xff]  }
 0x1cd   :  { %5383 = vmatprep.subr.bf16.mxu0 %v5787_v21 }
 0x1d0   :  { %5384 = vmatpush3.bf16.msra.mxu0 %v5788_v22 }
 0x1d1   :  { %5385 = vmatprep.subr.bf16.mxu0 %v5792_v23 }
 0x1d4   :  { %5386 = vmatpush3.bf16.msra.mxu0 %v5793_v24 }
 0x1d5   :  { %5387 = vmatprep.subr.bf16.mxu0 %v5797_v43 }
 0x1d8   :  { %5388 = vmatpush3.bf16.msra.mxu0 %v5798_v25 }
 0x1d9   :  { %5389 = vmatprep.subr.bf16.mxu0 %v5802_v26 }
 0x1dc   :  { %5390 = vmatpush3.bf16.msra.mxu0 %v5803_v27 }
 0x1dd   :  { %5397 = vmatprep.subr.bf16.mxu0 %v5807_v28 }
 0x232   :  { %v865_v36 = vpop.f32.mrb[4].mxu0  ;;  %v6631_v37 = vpop.f32.mrb[0].mxu1 }
 0x233   :  { %v866_v38 = vadd.f32 %v865_v36, %v294_v34  ;;  %v867_v40 = vpop.f32.mrb[5].mxu0  ;;  %v6633_v41 = vpop.f32.mrb[1].mxu1  ;;  %v5843_v34 = vld [vmem:[#allocation10 + $0x230] ss:$12 sps:$4 sm:$0xff]  }
 0x234   :  { %v868_v42 = vadd.f32 %v867_v40, %v298_v35  ;;  %v869_v44 = vpop.f32.mrb[6].mxu0  ;;  %v951_v45 = vpop.f32.mrb[2].mxu1  ;;  %v950_v23 = vadd.f32 %v6633_v41, %v314_v14  ;;  %v5846_v40 = vld [vmem:[#allocation10 + $0x244] ss:$12 sps:$4 sm:$0xff]  }
 0x235   :  { %v1077_v46 = vmax.f32 %v866_v38, 0.0  ;;  %v870_v47 = vpop.f32.mrb[7].mxu0  ;;  %v952_v48 = vpop.f32.mrb[3].mxu1 }
 0x236   :  { %v1078_v49 = vmax.f32 %v868_v42, 0.0  ;;  %v5847_v42 = vld [vmem:[#allocation11 + $0x40] sm:$0xff]   ;;  %v1082_v41 = vmax.f32 %v950_v23, 0.0 }
 0x237   :  { %v1089_v53 = vpack.c.bf16 %v1077_v46, %v1077_v46  ;;  %v5844_v46 = vld [vmem:[#allocation10 + $0x240] ss:$12 sps:$4 sm:$0xff]  }
 0x238   :  { %v1090_v50 = vpack.c.bf16 %v1078_v49, %v1078_v49  ;;  %v5848_v47 = vld [vmem:[#allocation11] sm:$0xff]   ;;  %v5851_v49 = vld [vmem:[#allocation10 + $0x25c] ss:$12 sps:$4 sm:$0xff]  }
 0x23a   :  { %1789 = vmatprep.mubr.bf16.mxu1 %v1090_v50  ;;  %1871 = vmatprep.mubr.bf16.mxu0 %v1090_v50  ;;  %v5852_v50 = vld [vmem:[#allocation11 + $0x48] sm:$0xff]  }
 0x23b   :  { %1790 = vmatmul.mubr.bf16.vlgmr.msra.gmra.mrb[8].mxu1 %v1089_v53  ;;  %1872 = vmatmul.mubr.bf16.vlgmr.msra.gmra.mrb[20].mxu0 %v1089_v53  ;;  %v5853_v53 = vld [vmem:[#allocation11 + $0x8] sm:$0xff]  }
 0x23c   :  { %1799 = vmatpush1.bf16.msra.mxu1 %v5804_v51  ;;  %5398 = vmatpush3.bf16.msra.mxu0 %v5808_v52  ;;  %v1094_v51 = vpack.c.bf16 %v1082_v41, %v1082_v41  ;;  %v5849_v52 = vld [vmem:[#allocation10 + $0x258] ss:$12 sps:$4 sm:$0xff]   ;;  %v5889_v41 = vld [vmem:[#allocation11 + $0xc8] sm:$0xff]  }
 0x23d   :  { %1800 = vmatprep.subr.bf16.mxu1 %v5811_v54  ;;  %5399 = vmatprep.subr.bf16.mxu0 %v5812_v55  ;;  %v5856_v54 = vld [vmem:[#allocation10 + $0x274] ss:$12 sps:$4 sm:$0xff]  }
 0x23e   :  { %v5857_v55 = vld [vmem:[#allocation11 + $0x50] sm:$0xff]  }
 0x240   :  { %1801 = vmatpush1.bf16.msra.mxu1 %v5809_v56  ;;  %5400 = vmatpush3.bf16.msra.mxu0 %v5813_v57  ;;  %v5854_v56 = vld [vmem:[#allocation10 + $0x270] ss:$12 sps:$4 sm:$0xff]  }
 0x241   :  { %1802 = vmatprep.subr.bf16.mxu1 %v5816_v58  ;;  %5401 = vmatprep.subr.bf16.mxu0 %v5817_v59  ;;  %v5858_v57 = vld [vmem:[#allocation11 + $0x10] sm:$0xff]   ;;  %v5861_v58 = vld [vmem:[#allocation10 + $0x28c] ss:$12 sps:$4 sm:$0xff]  }
 0x242   :  { %v5862_v59 = vld [vmem:[#allocation11 + $0x58] sm:$0xff]  }
 0x244   :  { %1803 = vmatpush1.bf16.msra.mxu1 %v5814_v60  ;;  %5402 = vmatpush3.bf16.msra.mxu0 %v5818_v39  ;;  %v5859_v60 = vld [vmem:[#allocation10 + $0x288] ss:$12 sps:$4 sm:$0xff]   ;;  %v5863_v39 = vld [vmem:[#allocation11 + $0x18] sm:$0xff]  }
 0x245   :  { %1804 = vmatprep.subr.bf16.mxu1 %v5821_v61  ;;  %5403 = vmatprep.subr.bf16.mxu0 %v5822_v62  ;;  %v5866_v61 = vld [vmem:[#allocation10 + $0x2a4] ss:$12 sps:$4 sm:$0xff]  }
 0x246   :  { %v5867_v62 = vld [vmem:[#allocation11 + $0x60] sm:$0xff]  }
 0x248   :  { %1805 = vmatpush1.bf16.msra.mxu1 %v5819_v63  ;;  %5404 = vmatpush3.bf16.msra.mxu0 %v5823_v0  ;;  %v5864_v63 = vld [vmem:[#allocation10 + $0x2a0] ss:$12 sps:$4 sm:$0xff]  }
 0x249   :  { %1806 = vmatprep.subr.bf16.mxu1 %v5826_v1  ;;  %5405 = vmatprep.subr.bf16.mxu0 %v5827_v2  ;;  %v5868_v0 = vld [vmem:[#allocation11 + $0x20] sm:$0xff]   ;;  %v309_v1 = vsub.s32 4, %v6617_v30  ;;  %v5871_v2 = vld [vmem:[#allocation10 + $0x2bc] ss:$12 sps:$4 sm:$0xff]  }
 0x24c   :  { %1807 = vmatpush1.bf16.msra.mxu1 %v5824_v3  ;;  %5406 = vmatpush3.bf16.msra.mxu0 %v5828_v4  ;;  %v5872_v3 = vld [vmem:[#allocation11 + $0x68] sm:$0xff]   ;;  %v6658_v4 = vld [vmem:[#allocation8 + $0x8] sm:$0xf] }
 0x24d   :  { %1808 = vmatprep.subr.bf16.mxu1 %v5831_v5  ;;  %5407 = vmatprep.subr.bf16.mxu0 %v5832_v6  ;;  %v5869_v5 = vld [vmem:[#allocation10 + $0x2b8] ss:$12 sps:$4 sm:$0xff]   ;;  %v5873_v6 = vld [vmem:[#allocation11 + $0x28] sm:$0xff]   ;;  %v330_v14 = vrot.slane %v6658_v4, %v6625_v33 }
 0x250   :  { %1809 = vmatpush1.bf16.msra.mxu1 %v5829_v9  ;;  %5408 = vmatpush3.bf16.msra.mxu0 %v5833_v10  ;;  %v321_v9 = vsub.s32 7, %v6617_v30  ;;  %v310_v10 = vrot.slane %v6622_v32, %v309_v1 }
 0x251   :  { %1810 = vmatprep.subr.bf16.mxu1 %v5836_v12  ;;  %5409 = vmatprep.subr.bf16.mxu0 %v5837_v13  ;;  %v5876_v12 = vld [vmem:[#allocation10 + $0x2d4] ss:$12 sps:$4 sm:$0xff]  }
 0x252   :  { %v906_v21 = vpop.f32.mrb[8].mxu0  ;;  %v6649_v22 = vpop.f32.mrb[4].mxu1  ;;  %v5877_v13 = vld [vmem:[#allocation11 + $0x70] sm:$0xff]  }
 0x253   :  { %v907_v24 = vadd.f32 %v906_v21, %v302_v15  ;;  %v908_v43 = vpop.f32.mrb[9].mxu0  ;;  %v6652_v25 = vpop.f32.mrb[5].mxu1  ;;  %v322_v15 = vrot.slane %v6622_v32, %v321_v9 }
 0x254   :  { %v909_v26 = vadd.f32 %v908_v43, %v306_v16  ;;  %v910_v27 = vpop.f32.mrb[10].mxu0  ;;  %v1033_v28 = vpop.f32.mrb[6].mxu1  ;;  %1811 = vmatpush1.bf16.msra.mxu1 %v5834_v17  ;;  %5410 = vmatpush3.bf16.msra.mxu0 %v5838_v18  ;;  %v5874_v16 = vld [vmem:[#allocation10 + $0x2d0] ss:$12 sps:$4 sm:$0xff]   ;;  %v948_v18 = vadd.f32 %v6631_v37, %v310_v10  ;;  %v1032_v23 = vadd.f32 %v6652_v25, %v330_v14  ;;  %v5884_v37 = vld [vmem:[#allocation11 + $0xc0] sm:$0xff]  }
 0x255   :  { %v1079_v35 = vmax.f32 %v907_v24, 0.0  ;;  %v911_v36 = vpop.f32.mrb[11].mxu0  ;;  %v1034_v38 = vpop.f32.mrb[7].mxu1  ;;  %1812 = vmatprep.subr.bf16.mxu1 %v5841_v19  ;;  %5411 = vmatprep.subr.bf16.mxu0 %v5842_v20  ;;  %v5878_v17 = vld [vmem:[#allocation11 + $0x30] sm:$0xff]   ;;  %v5881_v19 = vld [vmem:[#allocation10 + $0x2ec] ss:$12 sps:$4 sm:$0xff]  }
 0x256   :  { %v1080_v44 = vmax.f32 %v909_v26, 0.0  ;;  %v5882_v20 = vld [vmem:[#allocation11 + $0x78] sm:$0xff]   ;;  %v5879_v27 = vld [vmem:[#allocation10 + $0x2e8] ss:$12 sps:$4 sm:$0xff]   ;;  %v1086_v38 = vmax.f32 %v1032_v23, 0.0 }
 0x257   :  { %v6654_v48 = vpack.c.bf16 %v1079_v35, %v1079_v35  ;;  %v5883_v28 = vld [vmem:[#allocation11 + $0x38] sm:$0xff]   ;;  %v5922_v14 = vld [vmem:[#allocation13 + $0x154] ss:$24 sps:$4 sm:$0xff]   ;;  %v5927_v23 = vld [vmem:[#allocation13 + $0x8] ss:$24 sps:$4 sm:$0xff]  }
 0x258   :  { %v1092_v45 = vpack.c.bf16 %v1080_v44, %v1080_v44  ;;  %1813 = vmatpush1.bf16.msra.mxu1 %v5839_v29  ;;  %5412 = vmatpush3.bf16.msra.mxu0 %v5843_v34  ;;  %v1081_v29 = vmax.f32 %v948_v18, 0.0  ;;  %v5887_v35 = vld [vmem:[#allocation13 + $0x4] ss:$24 sps:$4 sm:$0xff]   ;;  %v5885_v25 = vld [vmem:[#allocation13] ss:$24 sps:$4 sm:$0xff]  }
 0x259   :  { %1814 = vmatprep.subr.bf16.mxu1 %v5846_v40  ;;  %5419 = vmatprep.subr.bf16.mxu0 %v5847_v42  ;;  %v5888_v40 = vld [vmem:[#allocation11 + $0x80] sm:$0xff]  }
 0x25a   :  { %1830 = vmatprep.mubr.bf16.mxu1 %v1092_v45  ;;  %1911 = vmatprep.mubr.bf16.mxu0 %v1092_v45  ;;  %v1093_v42 = vpack.c.bf16 %v1081_v29, %v1081_v29  ;;  %v5892_v45 = vld [vmem:[#allocation13 + $0x34] ss:$24 sps:$4 sm:$0xff]   ;;  %v5915_v10 = vld [vmem:[#allocation13 + $0x120] ss:$24 sps:$4 sm:$0xff]   ;;  %v5930_v29 = vld [vmem:[#allocation13 + $0x1b0] ss:$24 sps:$4 sm:$0xff]  }
 0x25b   :  { %1912 = vmatmul.mubr.bf16.vlgmr.msra.gmra.mrb[24].mxu0 %v6654_v48 }
 0x25c   :  { %1815 = vmatpush1.bf16.msra.mxu1 %v5844_v46  ;;  %5420 = vmatpush3.bf16.msra.mxu0 %v5848_v47  ;;  %v6671_v46 = vpack.c.bf16 %v1086_v38, %v1086_v38  ;;  %v5893_v47 = vld [vmem:[#allocation11 + $0x88] sm:$0xff]   ;;  %v5947_v38 = vld [vmem:[#allocation13 + $0x9c] ss:$24 sps:$4 sm:$0xff]  }
 0x25d   :  { %2219 = vmatprep.mubr.bf16.mxu0 %v1094_v51  ;;  %1816 = vmatprep.subr.bf16.mxu1 %v5851_v49  ;;  %v5890_v49 = vld [vmem:[#allocation13 + $0x30] ss:$24 sps:$4 sm:$0xff]   ;;  %v5897_v51 = vld [vmem:[#allocation13 + $0x64] ss:$24 sps:$4 sm:$0xff]  }
 0x25e   :  { %5421 = vmatprep.subr.bf16.mxu0 %v5852_v50  ;;  %v5894_v50 = vld [vmem:[#allocation11 + $0xd0] sm:$0xff]  }
 0x260   :  { %1817 = vmatpush1.bf16.msra.mxu1 %v5849_v52  ;;  %5422 = vmatpush3.bf16.msra.mxu0 %v5853_v53  ;;  %v5898_v52 = vld [vmem:[#allocation11 + $0x90] sm:$0xff]   ;;  %v5895_v53 = vld [vmem:[#allocation13 + $0x60] ss:$24 sps:$4 sm:$0xff]  }
 0x261   :  { %1818 = vmatprep.subr.bf16.mxu1 %v5856_v54  ;;  %5423 = vmatprep.subr.bf16.mxu0 %v5857_v55  ;;  %v5899_v54 = vld [vmem:[#allocation11 + $0xd8] sm:$0xff]  }
 0x262   :  { %v5903_v55 = vld [vmem:[#allocation11 + $0x98] sm:$0xff]  }
 0x264   :  { %1819 = vmatpush1.bf16.msra.mxu1 %v5854_v56  ;;  %5424 = vmatpush3.bf16.msra.mxu0 %v5858_v57  ;;  %v5900_v56 = vld [vmem:[#allocation13 + $0x90] ss:$24 sps:$4 sm:$0xff]   ;;  %v5904_v57 = vld [vmem:[#allocation11 + $0xe0] sm:$0xff]  }
 0x265   :  { %1820 = vmatprep.subr.bf16.mxu1 %v5861_v58  ;;  %5425 = vmatprep.subr.bf16.mxu0 %v5862_v59  ;;  %v5907_v58 = vld [vmem:[#allocation13 + $0xc4] ss:$24 sps:$4 sm:$0xff]  }
 0x266   :  { %v5908_v59 = vld [vmem:[#allocation11 + $0xa0] sm:$0xff]  }
 0x268   :  { %1821 = vmatpush1.bf16.msra.mxu1 %v5859_v60  ;;  %5426 = vmatpush3.bf16.msra.mxu0 %v5863_v39  ;;  %v317_v60 = vsub.s32 6, %v6617_v30  ;;  %v5905_v39 = vld [vmem:[#allocation13 + $0xc0] ss:$24 sps:$4 sm:$0xff]  }
 0x269   :  { %1822 = vmatprep.subr.bf16.mxu1 %v5866_v61  ;;  %5427 = vmatprep.subr.bf16.mxu0 %v5867_v62  ;;  %v5909_v61 = vld [vmem:[#allocation11 + $0xe8] sm:$0xff]  }
 0x26a   :  { %v5912_v62 = vld [vmem:[#allocation13 + $0xf4] ss:$24 sps:$4 sm:$0xff]  }
 0x26c   :  { %1823 = vmatpush1.bf16.msra.mxu1 %v5864_v63  ;;  %5428 = vmatpush3.bf16.msra.mxu0 %v5868_v0  ;;  %v5913_v63 = vld [vmem:[#allocation11 + $0xa8] sm:$0xff]   ;;  %v318_v0 = vrot.slane %v6622_v32, %v317_v60 }
 0x26d   :  { %1824 = vmatprep.subr.bf16.mxu1 %v5871_v2  ;;  %5429 = vmatprep.subr.bf16.mxu0 %v5872_v3  ;;  %v5910_v2 = vld [vmem:[#allocation13 + $0xf0] ss:$24 sps:$4 sm:$0xff]   ;;  %v5968_v60 = vld [vmem:[#allocation13 + $0x2d4] ss:$24 sps:$4 sm:$0xff]  }
 0x26e   :  { %v5914_v3 = vld [vmem:[#allocation11 + $0xf0] sm:$0xff]  }
 0x270   :  { %1825 = vmatpush1.bf16.msra.mxu1 %v5869_v5  ;;  %5430 = vmatpush3.bf16.msra.mxu0 %v5873_v6  ;;  %v5917_v5 = vld [vmem:[#allocation13 + $0x124] ss:$24 sps:$4 sm:$0xff]   ;;  %v5918_v6 = vld [vmem:[#allocation11 + $0xb0] sm:$0xff]  }
 0x271   :  { %1826 = vmatprep.subr.bf16.mxu1 %v5876_v12  ;;  %5431 = vmatprep.subr.bf16.mxu0 %v5877_v13  ;;  %v5919_v12 = vld [vmem:[#allocation11 + $0xf8] sm:$0xff]  }
 0x272   :  { %v6668_v21 = vpop.f32.mrb[12].mxu0 }
 0x273   :  { %v990_v24 = vpop.f32.mrb[13].mxu0  ;;  %v989_v9 = vadd.f32 %v6668_v21, %v318_v0  ;;  %v5926_v21 = vld [vmem:[#allocation13 + $0x184] ss:$24 sps:$4 sm:$0xff]  }
 0x274   :  { %v991_v43 = vadd.f32 %v990_v24, %v322_v15  ;;  %v992_v26 = vpop.f32.mrb[14].mxu0  ;;  %1827 = vmatpush1.bf16.msra.mxu1 %v5874_v16  ;;  %5432 = vmatpush3.bf16.msra.mxu0 %v5878_v17  ;;  %v5923_v16 = vld [vmem:[#allocation11 + $0xb8] sm:$0xff]  }
 0x275   :  { %v993_v34 = vpop.f32.mrb[15].mxu0  ;;  %1828 = vmatprep.subr.bf16.mxu1 %v5881_v19  ;;  %5433 = vmatprep.subr.bf16.mxu0 %v5882_v20  ;;  %v1083_v17 = vmax.f32 %v989_v9, 0.0  ;;  %v5920_v19 = vld [vmem:[#allocation13 + $0x150] ss:$24 sps:$4 sm:$0xff]   ;;  %v5929_v20 = vld [vmem:[#allocation13 + $0xc] ss:$24 sps:$4 sm:$0xff]  }
 0x276   :  { %v1084_v36 = vmax.f32 %v991_v43, 0.0  ;;  %v5924_v43 = vld [vmem:[#allocation13 + $0x180] ss:$24 sps:$4 sm:$0xff]   ;;  %v5935_v26 = vld [vmem:[#allocation13 + $0x3c] ss:$24 sps:$4 sm:$0xff]  }
 0x277   :  { %v1095_v24 = vpack.c.bf16 %v1083_v17, %v1083_v17  ;;  %v5941_v34 = vld [vmem:[#allocation13 + $0x6c] ss:$24 sps:$4 sm:$0xff]   ;;  %v5987_v17 = vld [vmem:[#allocation13 + $0x1e8] ss:$24 sps:$4 sm:$0xff]  }
 0x278   :  { %1829 = vmatpush1.bf16.msra.mxu1 %v5879_v27  ;;  %5434 = vmatpush3.bf16.msra.mxu0 %v5883_v28  ;;  %v1096_v44 = vpack.c.bf16 %v1084_v36, %v1084_v36  ;;  %v5932_v27 = vld [vmem:[#allocation13 + $0x1b4] ss:$24 sps:$4 sm:$0xff]   ;;  %v5933_v28 = vld [vmem:[#allocation13 + $0x38] ss:$24 sps:$4 sm:$0xff]  }
 0x279   :  { %5441 = vmatprep.subr.bf16.mxu0 %v5884_v37  ;;  %3451 = vmatprep.subr.bf16.mxu1 %v5887_v35  ;;  %v5938_v37 = vld [vmem:[#allocation13 + $0x1e4] ss:$24 sps:$4 sm:$0xff]   ;;  %v5939_v35 = vld [vmem:[#allocation13 + $0x68] ss:$24 sps:$4 sm:$0xff]   ;;  %v5980_v9 = vld [vmem:[#allocation13 + $0x334] ss:$24 sps:$4 sm:$0xff]  }
 0x27a   :  { %v5936_v36 = vld [vmem:[#allocation13 + $0x1e0] ss:$24 sps:$4 sm:$0xff]  }
 0x27b   :  { %1831 = vmatmul.mubr.bf16.vlgmr.msra.gmra.mrb[8].mxu1 %v6654_v48  ;;  %2220 = vmatmul.mubr.bf16.vlgmr.msra.gmra.mrb[28].mxu0 %v1093_v42  ;;  %v5902_v48 = vld [vmem:[#allocation13 + $0x94] ss:$24 sps:$4 sm:$0xff]   ;;  %v5945_v42 = vld [vmem:[#allocation13 + $0x98] ss:$24 sps:$4 sm:$0xff]  }
 0x27c   :  { %5442 = vmatpush3.bf16.msra.mxu0 %v5888_v40  ;;  %2259 = vmatprep.mubr.bf16.mxu0 %v1096_v44  ;;  %v5944_v40 = vld [vmem:[#allocation13 + $0x214] ss:$24 sps:$4 sm:$0xff]  }
 0x27d   :  { %3452 = vmatpush1.bf16.msra.mxu1 %v5885_v25  ;;  %3483 = vmatprep.mubr.bf16.mxu1 %v6671_v46  ;;  %v5942_v25 = vld [vmem:[#allocation13 + $0x210] ss:$24 sps:$4 sm:$0xff]   ;;  %v5953_v44 = vld [vmem:[#allocation13 + $0xcc] ss:$24 sps:$4 sm:$0xff]  }
 0x27e   :  { %5443 = vmatprep.subr.bf16.mxu0 %v5889_v41  ;;  %3453 = vmatprep.subr.bf16.mxu1 %v5892_v45  ;;  %v5950_v41 = vld [vmem:[#allocation13 + $0x244] ss:$24 sps:$4 sm:$0xff]   ;;  %v5951_v45 = vld [vmem:[#allocation13 + $0xc8] ss:$24 sps:$4 sm:$0xff]  }
 0x280   :  { %5444 = vmatpush3.bf16.msra.mxu0 %v5893_v47  ;;  %v5948_v47 = vld [vmem:[#allocation13 + $0x240] ss:$24 sps:$4 sm:$0xff]  }
 0x281   :  { %3454 = vmatpush1.bf16.msra.mxu1 %v5890_v49  ;;  %5445 = vmatprep.subr.bf16.mxu0 %v5894_v50  ;;  %v5959_v49 = vld [vmem:[#allocation13 + $0xfc] ss:$24 sps:$4 sm:$0xff]  }
 0x282   :  { %3455 = vmatprep.subr.bf16.mxu1 %v5897_v51  ;;  %v5956_v50 = vld [vmem:[#allocation13 + $0x274] ss:$24 sps:$4 sm:$0xff]   ;;  %v5957_v51 = vld [vmem:[#allocation13 + $0xf8] ss:$24 sps:$4 sm:$0xff]  }
 0x284   :  { %5446 = vmatpush3.bf16.msra.mxu0 %v5898_v52  ;;  %v5954_v52 = vld [vmem:[#allocation13 + $0x270] ss:$24 sps:$4 sm:$0xff]  }
 0x285   :  { %3456 = vmatpush1.bf16.msra.mxu1 %v5895_v53  ;;  %5447 = vmatprep.subr.bf16.mxu0 %v5899_v54  ;;  %v5965_v53 = vld [vmem:[#allocation13 + $0x12c] ss:$24 sps:$4 sm:$0xff]   ;;  %v326_v54 = vrot.slane %v6658_v4, %v6620_v31 }
 0x286   :  { %3457 = vmatprep.subr.bf16.mxu1 %v5902_v48  ;;  %v5962_v48 = vld [vmem:[#allocation13 + $0x2a4] ss:$24 sps:$4 sm:$0xff]  }
 0x288   :  { %5448 = vmatpush3.bf16.msra.mxu0 %v5903_v55  ;;  %v338_v55 = vrot.slane %v6658_v4, %v6640_v11 }
 0x289   :  { %3458 = vmatpush1.bf16.msra.mxu1 %v5900_v56  ;;  %5449 = vmatprep.subr.bf16.mxu0 %v5904_v57  ;;  %v5963_v56 = vld [vmem:[#allocation13 + $0x128] ss:$24 sps:$4 sm:$0xff]  }
 0x28a   :  { %3459 = vmatprep.subr.bf16.mxu1 %v5907_v58  ;;  %v5960_v57 = vld [vmem:[#allocation13 + $0x2a0] ss:$24 sps:$4 sm:$0xff]   ;;  %v5971_v58 = vld [vmem:[#allocation13 + $0x15c] ss:$24 sps:$4 sm:$0xff]  }
 0x28c   :  { %5450 = vmatpush3.bf16.msra.mxu0 %v5908_v59  ;;  %v1030_v59 = vadd.f32 %v6649_v22, %v326_v54  ;;  %v6026_v54 = vld [vmem:[#allocation13 + $0x4b0] ss:$24 sps:$4 sm:$0xff]  }
 0x28d   :  { %3460 = vmatpush1.bf16.msra.mxu1 %v5905_v39  ;;  %5451 = vmatprep.subr.bf16.mxu0 %v5909_v61  ;;  %v5969_v61 = vld [vmem:[#allocation13 + $0x158] ss:$24 sps:$4 sm:$0xff]  }
 0x28e   :  { %3461 = vmatprep.subr.bf16.mxu1 %v5912_v62  ;;  %v5966_v62 = vld [vmem:[#allocation13 + $0x2d0] ss:$24 sps:$4 sm:$0xff]   ;;  %v1085_v0 = vmax.f32 %v1030_v59, 0.0  ;;  %v6040_v59 = vld [vmem:[#allocation13 + $0x514] ss:$24 sps:$4 sm:$0xff]  }
 0x290   :  { %5452 = vmatpush3.bf16.msra.mxu0 %v5913_v63  ;;  %v5977_v63 = vld [vmem:[#allocation13 + $0x18c] ss:$24 sps:$4 sm:$0xff]   ;;  %v6689_v22 = vpack.c.bf16 %v1085_v0, %v1085_v0  ;;  %v6044_v0 = vld [vmem:[#allocation13 + $0x540] ss:$24 sps:$4 sm:$0xff]  }
 0x291   :  { %3462 = vmatpush1.bf16.msra.mxu1 %v5910_v2  ;;  %5453 = vmatprep.subr.bf16.mxu0 %v5914_v3  ;;  %v5974_v2 = vld [vmem:[#allocation13 + $0x304] ss:$24 sps:$4 sm:$0xff]  }
 0x292   :  { %v6678_v13 = vpop.f32.mrb[16].mxu0  ;;  %3463 = vmatprep.subr.bf16.mxu1 %v5917_v5  ;;  %v5975_v5 = vld [vmem:[#allocation13 + $0x188] ss:$24 sps:$4 sm:$0xff]  }
 0x293   :  { %v6680_v15 = vpop.f32.mrb[17].mxu0 }
 0x294   :  { %v1074_v32 = vpop.f32.mrb[18].mxu0  ;;  %5454 = vmatpush3.bf16.msra.mxu0 %v5918_v6  ;;  %v1073_v39 = vadd.f32 %v6680_v15, %v338_v55  ;;  %v5972_v6 = vld [vmem:[#allocation13 + $0x300] ss:$24 sps:$4 sm:$0xff]   ;;  %v5978_v15 = vld [vmem:[#allocation13 + $0x330] ss:$24 sps:$4 sm:$0xff]  }
 0x295   :  { %3464 = vmatpush1.bf16.msra.mxu1 %v5915_v10  ;;  %v1075_v18 = vpop.f32.mrb[19].mxu0  ;;  %5455 = vmatprep.subr.bf16.mxu0 %v5919_v12  ;;  %v5983_v10 = vld [vmem:[#allocation13 + $0x1bc] ss:$24 sps:$4 sm:$0xff]   ;;  %v5989_v32 = vld [vmem:[#allocation13 + $0x1ec] ss:$24 sps:$4 sm:$0xff]  }
 0x296   :  { %3465 = vmatprep.subr.bf16.mxu1 %v5922_v14  ;;  %v1088_v3 = vmax.f32 %v1073_v39, 0.0  ;;  %v5981_v14 = vld [vmem:[#allocation13 + $0x1b8] ss:$24 sps:$4 sm:$0xff]   ;;  %v6034_v55 = vld [vmem:[#allocation13 + $0x4e4] ss:$24 sps:$4 sm:$0xff]  }
 0x297   :  { %v5984_v18 = vld [vmem:[#allocation13 + $0x360] ss:$24 sps:$4 sm:$0xff]   ;;  %v6038_v39 = vld [vmem:[#allocation13 + $0x510] ss:$24 sps:$4 sm:$0xff]  }
 0x298   :  { %5456 = vmatpush3.bf16.msra.mxu0 %v5923_v16  ;;  %v6691_v12 = vpack.c.bf16 %v1088_v3, %v1088_v3  ;;  %v5986_v16 = vld [vmem:[#allocation13 + $0x364] ss:$24 sps:$4 sm:$0xff]   ;;  %v6052_v3 = vld [vmem:[#allocation13 + $0x574] ss:$24 sps:$4 sm:$0xff]  }
 0x299   :  { %3466 = vmatpush1.bf16.msra.mxu1 %v5920_v19  ;;  %3533 = vmatprep.subr.bf16.mxu0 %v5929_v20  ;;  %v5995_v19 = vld [vmem:[#allocation13 + $0x21c] ss:$24 sps:$4 sm:$0xff]  }
 0x29a   :  { %3467 = vmatprep.subr.bf16.mxu1 %v5926_v21  ;;  %v5992_v20 = vld [vmem:[#allocation13 + $0x394] ss:$24 sps:$4 sm:$0xff]   ;;  %v5993_v21 = vld [vmem:[#allocation13 + $0x218] ss:$24 sps:$4 sm:$0xff]  }
 0x29b   :  { %2260 = vmatmul.mubr.bf16.vlgmr.msra.gmra.mrb[32].mxu0 %v1095_v24  ;;  %v6001_v24 = vld [vmem:[#allocation13 + $0x24c] ss:$24 sps:$4 sm:$0xff]  }
 0x29c   :  { %3534 = vmatpush1.bf16.msra.mxu0 %v5927_v23  ;;  %3565 = vmatprep.mubr.bf16.mxu0 %v6671_v46  ;;  %v5990_v23 = vld [vmem:[#allocation13 + $0x390] ss:$24 sps:$4 sm:$0xff]  }
 0x29d   :  { %3468 = vmatpush1.bf16.msra.mxu1 %v5924_v43  ;;  %3535 = vmatprep.subr.bf16.mxu0 %v5935_v26  ;;  %v5998_v43 = vld [vmem:[#allocation13 + $0x3c4] ss:$24 sps:$4 sm:$0xff]   ;;  %v5999_v26 = vld [vmem:[#allocation13 + $0x248] ss:$24 sps:$4 sm:$0xff]  }
 0x29e   :  { %3469 = vmatprep.subr.bf16.mxu1 %v5932_v27  ;;  %v5996_v27 = vld [vmem:[#allocation13 + $0x3c0] ss:$24 sps:$4 sm:$0xff]  }
 0x2a0   :  { %3536 = vmatpush1.bf16.msra.mxu0 %v5933_v28  ;;  %v6007_v28 = vld [vmem:[#allocation13 + $0x27c] ss:$24 sps:$4 sm:$0xff]  }
 0x2a1   :  { %3470 = vmatpush1.bf16.msra.mxu1 %v5930_v29  ;;  %3537 = vmatprep.subr.bf16.mxu0 %v5941_v34  ;;  %v6004_v29 = vld [vmem:[#allocation13 + $0x3f4] ss:$24 sps:$4 sm:$0xff]   ;;  %v6005_v34 = vld [vmem:[#allocation13 + $0x278] ss:$24 sps:$4 sm:$0xff]  }
 0x2a2   :  { %3471 = vmatprep.subr.bf16.mxu1 %v5938_v37  ;;  %v6002_v37 = vld [vmem:[#allocation13 + $0x3f0] ss:$24 sps:$4 sm:$0xff]  }
 0x2a4   :  { %3538 = vmatpush1.bf16.msra.mxu0 %v5939_v35  ;;  %v6013_v35 = vld [vmem:[#allocation13 + $0x2ac] ss:$24 sps:$4 sm:$0xff]  }
 0x2a5   :  { %3472 = vmatpush1.bf16.msra.mxu1 %v5936_v36  ;;  %3539 = vmatprep.subr.bf16.mxu0 %v5947_v38  ;;  %v6010_v36 = vld [vmem:[#allocation13 + $0x424] ss:$24 sps:$4 sm:$0xff]   ;;  %v6011_v38 = vld [vmem:[#allocation13 + $0x2a8] ss:$24 sps:$4 sm:$0xff]  }
 0x2a6   :  { %3473 = vmatprep.subr.bf16.mxu1 %v5944_v40  ;;  %v6008_v40 = vld [vmem:[#allocation13 + $0x420] ss:$24 sps:$4 sm:$0xff]  }
 0x2a8   :  { %3540 = vmatpush1.bf16.msra.mxu0 %v5945_v42  ;;  %v6019_v42 = vld [vmem:[#allocation13 + $0x2dc] ss:$24 sps:$4 sm:$0xff]  }
 0x2a9   :  { %3474 = vmatpush1.bf16.msra.mxu1 %v5942_v25  ;;  %3541 = vmatprep.subr.bf16.mxu0 %v5953_v44  ;;  %v6016_v25 = vld [vmem:[#allocation13 + $0x454] ss:$24 sps:$4 sm:$0xff]   ;;  %v6017_v44 = vld [vmem:[#allocation13 + $0x2d8] ss:$24 sps:$4 sm:$0xff]  }
 0x2aa   :  { %3475 = vmatprep.subr.bf16.mxu1 %v5950_v41  ;;  %v6014_v41 = vld [vmem:[#allocation13 + $0x450] ss:$24 sps:$4 sm:$0xff]  }
 0x2ac   :  { %3542 = vmatpush1.bf16.msra.mxu0 %v5951_v45  ;;  %v6025_v45 = vld [vmem:[#allocation13 + $0x30c] ss:$24 sps:$4 sm:$0xff]  }
 0x2ad   :  { %3476 = vmatpush1.bf16.msra.mxu1 %v5948_v47  ;;  %3543 = vmatprep.subr.bf16.mxu0 %v5959_v49  ;;  %v6022_v47 = vld [vmem:[#allocation13 + $0x484] ss:$24 sps:$4 sm:$0xff]   ;;  %v6023_v49 = vld [vmem:[#allocation13 + $0x308] ss:$24 sps:$4 sm:$0xff]  }
 0x2ae   :  { %3477 = vmatprep.subr.bf16.mxu1 %v5956_v50  ;;  %v6020_v50 = vld [vmem:[#allocation13 + $0x480] ss:$24 sps:$4 sm:$0xff]  }
 0x2b0   :  { %3544 = vmatpush1.bf16.msra.mxu0 %v5957_v51  ;;  %v6031_v51 = vld [vmem:[#allocation13 + $0x33c] ss:$24 sps:$4 sm:$0xff]  }
 0x2b1   :  { %3478 = vmatpush1.bf16.msra.mxu1 %v5954_v52  ;;  %3545 = vmatprep.subr.bf16.mxu0 %v5965_v53  ;;  %v6028_v52 = vld [vmem:[#allocation13 + $0x4b4] ss:$24 sps:$4 sm:$0xff]   ;;  %v6029_v53 = vld [vmem:[#allocation13 + $0x338] ss:$24 sps:$4 sm:$0xff]  }
 0x2b2   :  { %3479 = vmatprep.subr.bf16.mxu1 %v5962_v48  ;;  %v6037_v48 = vld [vmem:[#allocation13 + $0x36c] ss:$24 sps:$4 sm:$0xff]  }
 0x2b4   :  { %3546 = vmatpush1.bf16.msra.mxu0 %v5963_v56  ;;  %v6035_v56 = vld [vmem:[#allocation13 + $0x368] ss:$24 sps:$4 sm:$0xff]  }
 0x2b5   :  { %3480 = vmatpush1.bf16.msra.mxu1 %v5960_v57  ;;  %3547 = vmatprep.subr.bf16.mxu0 %v5971_v58  ;;  %v6032_v57 = vld [vmem:[#allocation13 + $0x4e0] ss:$24 sps:$4 sm:$0xff]   ;;  %v6043_v58 = vld [vmem:[#allocation13 + $0x39c] ss:$24 sps:$4 sm:$0xff]  }
 0x2b6   :  { %3481 = vmatprep.subr.bf16.mxu1 %v5968_v60  ;;  %v6041_v60 = vld [vmem:[#allocation13 + $0x398] ss:$24 sps:$4 sm:$0xff]  }
 0x2b8   :  { %3548 = vmatpush1.bf16.msra.mxu0 %v5969_v61  ;;  %v6049_v61 = vld [vmem:[#allocation13 + $0x3cc] ss:$24 sps:$4 sm:$0xff]  }
 0x2b9   :  { %3482 = vmatpush1.bf16.msra.mxu1 %v5966_v62  ;;  %3549 = vmatprep.subr.bf16.mxu0 %v5977_v63  ;;  %v6046_v62 = vld [vmem:[#allocation13 + $0x544] ss:$24 sps:$4 sm:$0xff]   ;;  %v6047_v63 = vld [vmem:[#allocation13 + $0x3c8] ss:$24 sps:$4 sm:$0xff]  }
 0x2ba   :  { %3492 = vmatprep.subr.bf16.mxu1 %v5974_v2  ;;  %v6055_v2 = vld [vmem:[#allocation13 + $0x3fc] ss:$24 sps:$4 sm:$0xff]  }
 0x2bc   :  { %3484 = vmatmul.mubr.bf16.vlgmr.msra.gmra.mrb[12].mxu1 %v6689_v22  ;;  %3550 = vmatpush1.bf16.msra.mxu0 %v5975_v5  ;;  %v6053_v5 = vld [vmem:[#allocation13 + $0x3f8] ss:$24 sps:$4 sm:$0xff]  }
 0x2bd   :  { %3493 = vmatpush1.bf16.msra.mxu1 %v5972_v6  ;;  %3524 = vmatprep.mubr.bf16.mxu1 %v6691_v12  ;;  %v6050_v6 = vld [vmem:[#allocation13 + $0x570] ss:$24 sps:$4 sm:$0xff]  }
 0x2be   :  { %3494 = vmatprep.subr.bf16.mxu1 %v5980_v9  ;;  %3551 = vmatprep.subr.bf16.mxu0 %v5983_v10  ;;  %v6061_v9 = vld [vmem:[#allocation13 + $0x42c] ss:$24 sps:$4 sm:$0xff]   ;;  %v334_v10 = vrot.slane %v6658_v4, %v6637_v8 }
 0x2bf   :  { %v6073_v4 = vld [vmem:[#allocation13 + $0x14] ss:$24 sps:$4 sm:$0xff]  }
 0x2c0   :  { %3552 = vmatpush1.bf16.msra.mxu0 %v5981_v14  ;;  %v6058_v14 = vld [vmem:[#allocation13 + $0x5a4] ss:$24 sps:$4 sm:$0xff]  }
 0x2c1   :  { %3495 = vmatpush1.bf16.msra.mxu1 %v5978_v15  ;;  %3553 = vmatprep.subr.bf16.mxu0 %v5989_v32  ;;  %v6059_v15 = vld [vmem:[#allocation13 + $0x428] ss:$24 sps:$4 sm:$0xff]  }
 0x2c2   :  { %3496 = vmatprep.subr.bf16.mxu1 %v5986_v16  ;;  %v6056_v32 = vld [vmem:[#allocation13 + $0x5a0] ss:$24 sps:$4 sm:$0xff]   ;;  %v6067_v16 = vld [vmem:[#allocation13 + $0x45c] ss:$24 sps:$4 sm:$0xff]  }
 0x2c4   :  { %3554 = vmatpush1.bf16.msra.mxu0 %v5987_v17  ;;  %v1071_v17 = vadd.f32 %v6678_v13, %v334_v10  ;;  %v6076_v13 = vld [vmem:[#allocation13 + $0x4bc] ss:$24 sps:$4 sm:$0xff]   ;;  %v6125_v10 = vld [vmem:[#allocation13 + $0x220] ss:$24 sps:$4 sm:$0xff]  }
 0x2c5   :  { %3497 = vmatpush1.bf16.msra.mxu1 %v5984_v18  ;;  %3555 = vmatprep.subr.bf16.mxu0 %v5995_v19  ;;  %v6064_v18 = vld [vmem:[#allocation13 + $0x5d4] ss:$24 sps:$4 sm:$0xff]   ;;  %v6065_v19 = vld [vmem:[#allocation13 + $0x458] ss:$24 sps:$4 sm:$0xff]  }
 0x2c6   :  { %3498 = vmatprep.subr.bf16.mxu1 %v5992_v20  ;;  %v6062_v20 = vld [vmem:[#allocation13 + $0x5d0] ss:$24 sps:$4 sm:$0xff]  }
 0x2c8   :  { %3556 = vmatpush1.bf16.msra.mxu0 %v5993_v21  ;;  %v6070_v21 = vld [vmem:[#allocation13 + $0x48c] ss:$24 sps:$4 sm:$0xff]  }
 0x2c9   :  { %3499 = vmatpush1.bf16.msra.mxu1 %v5990_v23  ;;  %3557 = vmatprep.subr.bf16.mxu0 %v6001_v24  ;;  %v1087_v23 = vmax.f32 %v1071_v17, 0.0  ;;  %v6068_v24 = vld [vmem:[#allocation13 + $0x488] ss:$24 sps:$4 sm:$0xff]  }
 0x2ca   :  { %3500 = vmatprep.subr.bf16.mxu1 %v5998_v43  ;;  %v6071_v43 = vld [vmem:[#allocation13 + $0x10] ss:$24 sps:$4 sm:$0xff]  }
 0x2cc   :  { %3558 = vmatpush1.bf16.msra.mxu0 %v5999_v26  ;;  %v6700_v26 = vpack.c.bf16 %v1087_v23, %v1087_v23 }
 0x2cd   :  { %3501 = vmatpush1.bf16.msra.mxu1 %v5996_v27  ;;  %3559 = vmatprep.subr.bf16.mxu0 %v6007_v28  ;;  %v6079_v27 = vld [vmem:[#allocation13 + $0x44] ss:$24 sps:$4 sm:$0xff]   ;;  %v6074_v28 = vld [vmem:[#allocation13 + $0x4b8] ss:$24 sps:$4 sm:$0xff]  }
 0x2ce   :  { %3502 = vmatprep.subr.bf16.mxu1 %v6004_v29  ;;  %v6077_v29 = vld [vmem:[#allocation13 + $0x40] ss:$24 sps:$4 sm:$0xff]  }
 0x2d0   :  { %3560 = vmatpush1.bf16.msra.mxu0 %v6005_v34  ;;  %v6082_v34 = vld [vmem:[#allocation13 + $0x4ec] ss:$24 sps:$4 sm:$0xff]  }
 0x2d1   :  { %3503 = vmatpush1.bf16.msra.mxu1 %v6002_v37  ;;  %3561 = vmatprep.subr.bf16.mxu0 %v6013_v35  ;;  %v6085_v37 = vld [vmem:[#allocation13 + $0x74] ss:$24 sps:$4 sm:$0xff]   ;;  %v6080_v35 = vld [vmem:[#allocation13 + $0x4e8] ss:$24 sps:$4 sm:$0xff]  }
 0x2d2   :  { %3504 = vmatprep.subr.bf16.mxu1 %v6010_v36  ;;  %v6083_v36 = vld [vmem:[#allocation13 + $0x70] ss:$24 sps:$4 sm:$0xff]  }
 0x2d4   :  { %3562 = vmatpush1.bf16.msra.mxu0 %v6011_v38  ;;  %v6088_v38 = vld [vmem:[#allocation13 + $0x51c] ss:$24 sps:$4 sm:$0xff]  }
 0x2d5   :  { %3505 = vmatpush1.bf16.msra.mxu1 %v6008_v40  ;;  %3563 = vmatprep.subr.bf16.mxu0 %v6019_v42  ;;  %v6091_v40 = vld [vmem:[#allocation13 + $0xa4] ss:$24 sps:$4 sm:$0xff]   ;;  %v6086_v42 = vld [vmem:[#allocation13 + $0x518] ss:$24 sps:$4 sm:$0xff]  }
 0x2d6   :  { %3506 = vmatprep.subr.bf16.mxu1 %v6016_v25  ;;  %v6089_v25 = vld [vmem:[#allocation13 + $0xa0] ss:$24 sps:$4 sm:$0xff]  }
 0x2d8   :  { %3564 = vmatpush1.bf16.msra.mxu0 %v6017_v44  ;;  %v6094_v44 = vld [vmem:[#allocation13 + $0x54c] ss:$24 sps:$4 sm:$0xff]  }
 0x2d9   :  { %3507 = vmatpush1.bf16.msra.mxu1 %v6014_v41  ;;  %3574 = vmatprep.subr.bf16.mxu0 %v6025_v45  ;;  %v6092_v41 = vld [vmem:[#allocation13 + $0x548] ss:$24 sps:$4 sm:$0xff]  }
 0x2da   :  { %3508 = vmatprep.subr.bf16.mxu1 %v6022_v47  ;;  %v6095_v45 = vld [vmem:[#allocation13 + $0xd0] ss:$24 sps:$4 sm:$0xff]   ;;  %v6100_v47 = vld [vmem:[#allocation13 + $0x57c] ss:$24 sps:$4 sm:$0xff]  }
 0x2db   :  { %3566 = vmatmul.mubr.bf16.vlgmr.msra.gmra.mrb[36].mxu0 %v6689_v22 }
 0x2dc   :  { %3575 = vmatpush1.bf16.msra.mxu0 %v6023_v49  ;;  %3606 = vmatprep.mubr.bf16.mxu0 %v6691_v12  ;;  %v6103_v49 = vld [vmem:[#allocation13 + $0x104] ss:$24 sps:$4 sm:$0xff]  }
 0x2dd   :  { %3509 = vmatpush1.bf16.msra.mxu1 %v6020_v50  ;;  %3576 = vmatprep.subr.bf16.mxu0 %v6031_v51  ;;  %v6098_v50 = vld [vmem:[#allocation13 + $0x578] ss:$24 sps:$4 sm:$0xff]  }
 0x2de   :  { %3510 = vmatprep.subr.bf16.mxu1 %v6028_v52  ;;  %v6101_v51 = vld [vmem:[#allocation13 + $0x100] ss:$24 sps:$4 sm:$0xff]   ;;  %v6106_v52 = vld [vmem:[#allocation13 + $0x5ac] ss:$24 sps:$4 sm:$0xff]  }
 0x2e0   :  { %3577 = vmatpush1.bf16.msra.mxu0 %v6029_v53 }
 0x2e1   :  { %3511 = vmatpush1.bf16.msra.mxu1 %v6026_v54  ;;  %3578 = vmatprep.subr.bf16.mxu0 %v6037_v48  ;;  %v6109_v54 = vld [vmem:[#allocation13 + $0x134] ss:$24 sps:$4 sm:$0xff]  }
 0x2e2   :  { %3512 = vmatprep.subr.bf16.mxu1 %v6034_v55 }
 0x2e4   :  { %3579 = vmatpush1.bf16.msra.mxu0 %v6035_v56 }
 0x2e5   :  { %3513 = vmatpush1.bf16.msra.mxu1 %v6032_v57  ;;  %3580 = vmatprep.subr.bf16.mxu0 %v6043_v58  ;;  %v6104_v57 = vld [vmem:[#allocation13 + $0x5a8] ss:$24 sps:$4 sm:$0xff]  }
 0x2e6   :  { %3514 = vmatprep.subr.bf16.mxu1 %v6040_v59  ;;  %v6107_v59 = vld [vmem:[#allocation13 + $0x130] ss:$24 sps:$4 sm:$0xff]  }
 0x2e8   :  { %3581 = vmatpush1.bf16.msra.mxu0 %v6041_v60  ;;  %v6112_v60 = vld [vmem:[#allocation13 + $0x5dc] ss:$24 sps:$4 sm:$0xff]  }
 0x2e9   :  { %3515 = vmatpush1.bf16.msra.mxu1 %v6038_v39  ;;  %3582 = vmatprep.subr.bf16.mxu0 %v6049_v61  ;;  %v6115_v39 = vld [vmem:[#allocation13 + $0x164] ss:$24 sps:$4 sm:$0xff]   ;;  %v6110_v61 = vld [vmem:[#allocation13 + $0x5d8] ss:$24 sps:$4 sm:$0xff]  }
 0x2ea   :  { %3516 = vmatprep.subr.bf16.mxu1 %v6046_v62  ;;  %v6113_v62 = vld [vmem:[#allocation13 + $0x160] ss:$24 sps:$4 sm:$0xff]  }
 0x2ec   :  { %3583 = vmatpush1.bf16.msra.mxu0 %v6047_v63  ;;  %v6118_v63 = vld [vmem:[#allocation13 + $0x194] ss:$24 sps:$4 sm:$0xff]  }
 0x2ed   :  { %3517 = vmatpush1.bf16.msra.mxu1 %v6044_v0  ;;  %3584 = vmatprep.subr.bf16.mxu0 %v6055_v2  ;;  %v6116_v0 = vld [vmem:[#allocation13 + $0x190] ss:$24 sps:$4 sm:$0xff]   ;;  %v6121_v2 = vld [vmem:[#allocation13 + $0x1c4] ss:$24 sps:$4 sm:$0xff]  }
 0x2ee   :  { %3518 = vmatprep.subr.bf16.mxu1 %v6052_v3  ;;  %v6119_v3 = vld [vmem:[#allocation13 + $0x1c0] ss:$24 sps:$4 sm:$0xff]  }
 0x2f0   :  { %3585 = vmatpush1.bf16.msra.mxu0 %v6053_v5  ;;  %v6124_v5 = vld [vmem:[#allocation13 + $0x1f4] ss:$24 sps:$4 sm:$0xff]  }
 0x2f1   :  { %3519 = vmatpush1.bf16.msra.mxu1 %v6050_v6  ;;  %3586 = vmatprep.subr.bf16.mxu0 %v6061_v9  ;;  %v6122_v6 = vld [vmem:[#allocation13 + $0x1f0] ss:$24 sps:$4 sm:$0xff]   ;;  %v6127_v9 = vld [vmem:[#allocation13 + $0x224] ss:$24 sps:$4 sm:$0xff]  }
 0x2f2   :  { %3520 = vmatprep.subr.bf16.mxu1 %v6058_v14  ;;  %v6130_v14 = vld [vmem:[#allocation13 + $0x254] ss:$24 sps:$4 sm:$0xff]  }
 0x2f4   :  { %3587 = vmatpush1.bf16.msra.mxu0 %v6059_v15  ;;  %v189_v15 = vld [vmem:[#allocation8 + $0xc] sm:$0x7] }
 0x2f5   :  { %3521 = vmatpush1.bf16.msra.mxu1 %v6056_v32  ;;  %3588 = vmatprep.subr.bf16.mxu0 %v6067_v16  ;;  %v6128_v32 = vld [vmem:[#allocation13 + $0x250] ss:$24 sps:$4 sm:$0xff]   ;;  %v6133_v16 = vld [vmem:[#allocation13 + $0x284] ss:$24 sps:$4 sm:$0xff]   ;;  %v1241_v17 = vrot.slane %v189_v15, %v6637_v8 }
 0x2f6   :  { %3522 = vmatprep.subr.bf16.mxu1 %v6064_v18  ;;  %v6131_v18 = vld [vmem:[#allocation13 + $0x280] ss:$24 sps:$4 sm:$0xff]  }
 0x2f8   :  { %3589 = vmatpush1.bf16.msra.mxu0 %v6065_v19 }
 0x2f9   :  { %3523 = vmatpush1.bf16.msra.mxu1 %v6062_v20  ;;  %3590 = vmatprep.subr.bf16.mxu0 %v6070_v21  ;;  %v6136_v20 = vld [vmem:[#allocation13 + $0x2b4] ss:$24 sps:$4 sm:$0xff]  }
 0x2fa   :  { %3615 = vmatprep.subr.bf16.mxu1 %v6073_v4 }
 0x2fc   :  { %3525 = vmatmul.mubr.bf16.vlgmr.msra.gmra.mrb[12].mxu1 %v6700_v26  ;;  %3591 = vmatpush1.bf16.msra.mxu0 %v6068_v24 }
 0x2fd   :  { %3616 = vmatpush1.bf16.msra.mxu1 %v6071_v43  ;;  %3647 = vmatprep.mubr.bf16.mxu1 %v6671_v46  ;;  %v6097_v46 = vld [vmem:[#allocation13 + $0xd4] ss:$24 sps:$4 sm:$0xff]  }
 0x2fe   :  { %3592 = vmatprep.subr.bf16.mxu0 %v6076_v13  ;;  %3617 = vmatprep.subr.bf16.mxu1 %v6079_v27  ;;  %v6134_v13 = vld [vmem:[#allocation13 + $0x2b0] ss:$24 sps:$4 sm:$0xff]  }
 0x300   :  { %3593 = vmatpush1.bf16.msra.mxu0 %v6074_v28  ;;  %v6139_v28 = vld [vmem:[#allocation13 + $0x2e4] ss:$24 sps:$4 sm:$0xff]  }
 0x301   :  { %3618 = vmatpush1.bf16.msra.mxu1 %v6077_v29  ;;  %3594 = vmatprep.subr.bf16.mxu0 %v6082_v34  ;;  %v6137_v29 = vld [vmem:[#allocation13 + $0x2e0] ss:$24 sps:$4 sm:$0xff]   ;;  %v6142_v34 = vld [vmem:[#allocation13 + $0x314] ss:$24 sps:$4 sm:$0xff]  }
 0x302   :  { %3619 = vmatprep.subr.bf16.mxu1 %v6085_v37  ;;  %v6140_v37 = vld [vmem:[#allocation13 + $0x310] ss:$24 sps:$4 sm:$0xff]  }
 0x304   :  { %3595 = vmatpush1.bf16.msra.mxu0 %v6080_v35  ;;  %v6145_v35 = vld [vmem:[#allocation13 + $0x344] ss:$24 sps:$4 sm:$0xff]  }
 0x305   :  { %3620 = vmatpush1.bf16.msra.mxu1 %v6083_v36  ;;  %3596 = vmatprep.subr.bf16.mxu0 %v6088_v38  ;;  %v6143_v36 = vld [vmem:[#allocation13 + $0x340] ss:$24 sps:$4 sm:$0xff]   ;;  %v6148_v38 = vld [vmem:[#allocation13 + $0x374] ss:$24 sps:$4 sm:$0xff]  }
 0x306   :  { %3621 = vmatprep.subr.bf16.mxu1 %v6091_v40  ;;  %v6146_v40 = vld [vmem:[#allocation13 + $0x370] ss:$24 sps:$4 sm:$0xff]  }
 0x308   :  { %3597 = vmatpush1.bf16.msra.mxu0 %v6086_v42  ;;  %v6151_v42 = vld [vmem:[#allocation13 + $0x3a4] ss:$24 sps:$4 sm:$0xff]  }
 0x309   :  { %3622 = vmatpush1.bf16.msra.mxu1 %v6089_v25  ;;  %3598 = vmatprep.subr.bf16.mxu0 %v6094_v44  ;;  %v6149_v25 = vld [vmem:[#allocation13 + $0x3a0] ss:$24 sps:$4 sm:$0xff]   ;;  %v6154_v44 = vld [vmem:[#allocation13 + $0x3d4] ss:$24 sps:$4 sm:$0xff]  }
 0x30a   :  { %3623 = vmatprep.subr.bf16.mxu1 %v6097_v46  ;;  %v6152_v46 = vld [vmem:[#allocation13 + $0x3d0] ss:$24 sps:$4 sm:$0xff]  }
 0x30c   :  { %3599 = vmatpush1.bf16.msra.mxu0 %v6092_v41  ;;  %v6157_v41 = vld [vmem:[#allocation13 + $0x404] ss:$24 sps:$4 sm:$0xff]  }
 0x30d   :  { %3624 = vmatpush1.bf16.msra.mxu1 %v6095_v45  ;;  %3600 = vmatprep.subr.bf16.mxu0 %v6100_v47  ;;  %v1237_v45 = vrot.slane %v189_v15, %v6625_v33 }
 0x30e   :  { %v5391_v53 = vpop.f32.mrb[20].mxu0  ;;  %3625 = vmatprep.subr.bf16.mxu1 %v6103_v49 }
 0x30f   :  { %v5392_v48 = vpop.f32.mrb[21].mxu0 }
 0x310   :  { %v5393_v55 = vadd.f32 %v5392_v48, %v5391_v53  ;;  %3601 = vmatpush1.bf16.msra.mxu0 %v6098_v50  ;;  %v5394_v56 = vpop.f32.mrb[22].mxu0  ;;  %v6160_v50 = vld [vmem:[#allocation13 + $0x434] ss:$24 sps:$4 sm:$0xff]  }
 0x311   :  { %3626 = vmatpush1.bf16.msra.mxu1 %v6101_v51  ;;  %v5395_v58 = vpop.f32.mrb[23].mxu0  ;;  %3602 = vmatprep.subr.bf16.mxu0 %v6106_v52 }
 0x312   :  { %3627 = vmatprep.subr.bf16.mxu1 %v6109_v54  ;;  %v1874_v23 = vadd.f32 %v5393_v55, %v1241_v17 }
 0x314   :  { %3603 = vmatpush1.bf16.msra.mxu0 %v6104_v57 }
 0x315   :  { %3628 = vmatpush1.bf16.msra.mxu1 %v6107_v59  ;;  %3604 = vmatprep.subr.bf16.mxu0 %v6112_v60  ;;  %v6158_v59 = vld [vmem:[#allocation13 + $0x430] ss:$24 sps:$4 sm:$0xff]  }
 0x316   :  { %3629 = vmatprep.subr.bf16.mxu1 %v6115_v39  ;;  %v6163_v39 = vld [vmem:[#allocation13 + $0x464] ss:$24 sps:$4 sm:$0xff]  }
 0x318   :  { %3605 = vmatpush1.bf16.msra.mxu0 %v6110_v61  ;;  %v6161_v61 = vld [vmem:[#allocation13 + $0x460] ss:$24 sps:$4 sm:$0xff]  }
 0x319   :  { %3630 = vmatpush1.bf16.msra.mxu1 %v6113_v62  ;;  %v6166_v62 = vld [vmem:[#allocation13 + $0x494] ss:$24 sps:$4 sm:$0xff]  }
 0x31a   :  { %3631 = vmatprep.subr.bf16.mxu1 %v6118_v63  ;;  %v6164_v63 = vld [vmem:[#allocation13 + $0x490] ss:$24 sps:$4 sm:$0xff]  }
 0x31b   :  { %3607 = vmatmul.mubr.bf16.vlgmr.msra.gmra.mrb[36].mxu0 %v6700_v26 }
 0x31d   :  { %3632 = vmatpush1.bf16.msra.mxu1 %v6116_v0  ;;  %v6169_v0 = vld [vmem:[#allocation13 + $0x4c4] ss:$24 sps:$4 sm:$0xff]  }
 0x31e   :  { %3633 = vmatprep.subr.bf16.mxu1 %v6121_v2  ;;  %v6167_v2 = vld [vmem:[#allocation13 + $0x4c0] ss:$24 sps:$4 sm:$0xff]  }
 0x321   :  { %3634 = vmatpush1.bf16.msra.mxu1 %v6119_v3  ;;  %v6172_v3 = vld [vmem:[#allocation13 + $0x4f4] ss:$24 sps:$4 sm:$0xff]  }
 0x322   :  { %3635 = vmatprep.subr.bf16.mxu1 %v6124_v5  ;;  %v6170_v5 = vld [vmem:[#allocation13 + $0x4f0] ss:$24 sps:$4 sm:$0xff]  }
 0x325   :  { %3636 = vmatpush1.bf16.msra.mxu1 %v6122_v6  ;;  %v6175_v6 = vld [vmem:[#allocation13 + $0x524] ss:$24 sps:$4 sm:$0xff]  }
 0x326   :  { %3637 = vmatprep.subr.bf16.mxu1 %v6127_v9  ;;  %v6173_v9 = vld [vmem:[#allocation13 + $0x520] ss:$24 sps:$4 sm:$0xff]  }
 0x329   :  { %3638 = vmatpush1.bf16.msra.mxu1 %v6125_v10  ;;  %v6178_v10 = vld [vmem:[#allocation13 + $0x554] ss:$24 sps:$4 sm:$0xff]  }
 0x32a   :  { %3639 = vmatprep.subr.bf16.mxu1 %v6130_v14  ;;  %v6176_v14 = vld [vmem:[#allocation13 + $0x550] ss:$24 sps:$4 sm:$0xff]  }
 0x32d   :  { %3640 = vmatpush1.bf16.msra.mxu1 %v6128_v32  ;;  %v5131_v32 = vld [vmem:[#allocation8 + $0xf] ss:$0 sm:$0xff] }
 0x32e   :  { %v5413_v19 = vpop.f32.mrb[24].mxu0  ;;  %3641 = vmatprep.subr.bf16.mxu1 %v6133_v16  ;;  %v6179_v16 = vld [vmem:[#allocation13 + $0x580] ss:$24 sps:$4 sm:$0xff]  }
 0x32f   :  { %v5414_v21 = vpop.f32.mrb[25].mxu0 }
 0x330   :  { %v5415_v4 = vadd.f32 %v5414_v21, %v5413_v19  ;;  %v5416_v24 = vpop.f32.mrb[26].mxu0 }
 0x331   :  { %3642 = vmatpush1.bf16.msra.mxu1 %v6131_v18  ;;  %v5417_v43 = vpop.f32.mrb[27].mxu0  ;;  %v6184_v18 = vld [vmem:[#allocation13 + $0x5b4] ss:$24 sps:$4 sm:$0xff]   ;;  %v6182_v24 = vld [vmem:[#allocation13 + $0x5b0] ss:$24 sps:$4 sm:$0xff]  }
 0x332   :  { %v1914_v27 = vadd.f32 %v5415_v4, %v1874_v23  ;;  %3643 = vmatprep.subr.bf16.mxu1 %v6136_v20 }
 0x334   :  { %1924 = vst [vmem:[#allocation14 + $0x8] sm:$0xf] %v1914_v27  ;;  %v6185_v27 = vld [vmem:[#allocation13 + $0x5e0] ss:$24 sps:$4 sm:$0xff]  }
 0x335   :  { %3644 = vmatpush1.bf16.msra.mxu1 %v6134_v13  ;;  %v6187_v13 = vld [vmem:[#allocation13 + $0x5e4] ss:$24 sps:$4 sm:$0xff]  }
 0x336   :  { %3645 = vmatprep.subr.bf16.mxu1 %v6139_v28  ;;  %v6711_v28 = vld [vmem:[#allocation8 + $0x10] sm:$0x3f] }
 0x339   :  { %3646 = vmatpush1.bf16.msra.mxu1 %v6137_v29  ;;  %v2464_v29 = vrot.slane %v6711_v28, %v6620_v31 }
 0x33a   :  { %3656 = vmatprep.subr.bf16.mxu1 %v6142_v34 }
 0x33c   :  { %3648 = vmatmul.mubr.bf16.vlgmr.msra.gmra.mrb[16].mxu1 %v6689_v22  ;;  %v1233_v22 = vrot.slane %v189_v15, %v6620_v31  ;;  %v6181_v15 = vld [vmem:[#allocation13 + $0x584] ss:$24 sps:$4 sm:$0xff]   ;;  %v2468_v31 = vrot.slane %v6711_v28, %v6625_v33 }
 0x33d   :  { %3657 = vmatpush1.bf16.msra.mxu1 %v6140_v37  ;;  %3688 = vmatprep.mubr.bf16.mxu1 %v6691_v12  ;;  %v6155_v12 = vld [vmem:[#allocation13 + $0x400] ss:$24 sps:$4 sm:$0xff]  }
 0x33e   :  { %3658 = vmatprep.subr.bf16.mxu1 %v6145_v35 }
 0x341   :  { %3659 = vmatpush1.bf16.msra.mxu1 %v6143_v36 }
 0x342   :  { %3660 = vmatprep.subr.bf16.mxu1 %v6148_v38 }
 0x345   :  { %3661 = vmatpush1.bf16.msra.mxu1 %v6146_v40 }
 0x346   :  { %3662 = vmatprep.subr.bf16.mxu1 %v6151_v42 }
 0x349   :  { %3663 = vmatpush1.bf16.msra.mxu1 %v6149_v25 }
 0x34a   :  { %3664 = vmatprep.subr.bf16.mxu1 %v6154_v44  ;;  %v2472_v44 = vrot.slane %v6711_v28, %v6637_v8  ;;  %v2476_v8 = vrot.slane %v6711_v28, %v6640_v11  ;;  %v6450_v11 = vmov 1983009808  }
 0x34d   :  { %3665 = vmatpush1.bf16.msra.mxu1 %v6152_v46 }
 0x34e   :  { %v1832_v47 = vpop.f32.mrb[8].mxu1  ;;  %v5435_v49 = vpop.f32.mrb[28].mxu0  ;;  %3666 = vmatprep.subr.bf16.mxu1 %v6157_v41 }
 0x34f   :  { %v5531_v51 = vadd.f32 %v1832_v47, %v1233_v22  ;;  %v1834_v52 = vpop.f32.mrb[9].mxu1  ;;  %v5436_v53 = vpop.f32.mrb[29].mxu0  ;;  %v3883_v22 = vunpack.c.l.s4 %v6450_v11 }
 0x350   :  { %v5532_v54 = vadd.f32 %v1834_v52, %v1237_v45  ;;  %v5437_v48 = vadd.f32 %v5436_v53, %v5435_v49  ;;  %v1836_v55 = vpop.f32.mrb[10].mxu1  ;;  %v5438_v56 = vpop.f32.mrb[30].mxu0 }
 0x351   :  { %3667 = vmatpush1.bf16.msra.mxu1 %v6155_v12  ;;  %v1837_v57 = vpop.f32.mrb[11].mxu1  ;;  %v5439_v58 = vpop.f32.mrb[31].mxu0  ;;  %v3884_v45 = vunpack.c.0.s8 %v3883_v22 }
 0x352   :  { %v1921_v60 = vcombine.low %v5531_v51, %v5532_v54  ;;  %3668 = vmatprep.subr.bf16.mxu1 %v6160_v50  ;;  %v2222_v20 = vadd.f32 %v5437_v48, %v5131_v32  ;;  %v6451_v54 = vmov 1934713408  }
 0x353   :  { %v6838_v49 = vsub.s32 %v3884_v45, %v6617_v30  ;;  %v3916_v48 = vunpack.c.l.s4 %v6451_v54 }
 0x354   :  { %1923 = vst [vmem:[#allocation14] sm:$0xff] %v1921_v60 }
 0x355   :  { %3669 = vmatpush1.bf16.msra.mxu1 %v6158_v59  ;;  %v2480_v59 = vrot.slane %v6711_v28, %v309_v1 }
 0x356   :  { %3670 = vmatprep.subr.bf16.mxu1 %v6163_v39  ;;  %v3917_v39 = vunpack.c.0.s8 %v3916_v48 }
 0x358   :  { %v6856_v1 = vsub.s32 %v3917_v39, %v6617_v30 }
 0x359   :  { %3671 = vmatpush1.bf16.msra.mxu1 %v6161_v61 }
 0x35a   :  { %3672 = vmatprep.subr.bf16.mxu1 %v6166_v62 }
 0x35d   :  { %3673 = vmatpush1.bf16.msra.mxu1 %v6164_v63 }
 0x35e   :  { %3674 = vmatprep.subr.bf16.mxu1 %v6169_v0  ;;  %v2484_v0 = vrot.slane %v6711_v28, %v313_v7 }
 0x361   :  { %3675 = vmatpush1.bf16.msra.mxu1 %v6167_v2 }
 0x362   :  { %3676 = vmatprep.subr.bf16.mxu1 %v6172_v3 }
 0x365   :  { %3677 = vmatpush1.bf16.msra.mxu1 %v6170_v5 }
 0x366   :  { %3678 = vmatprep.subr.bf16.mxu1 %v6175_v6 }
 0x369   :  { %3679 = vmatpush1.bf16.msra.mxu1 %v6173_v9 }
 0x36a   :  { %3680 = vmatprep.subr.bf16.mxu1 %v6178_v10 }
 0x36d   :  { %3681 = vmatpush1.bf16.msra.mxu1 %v6176_v14 }
 0x36e   :  { %v5457_v17 = vpop.f32.mrb[32].mxu0  ;;  %3682 = vmatprep.subr.bf16.mxu1 %v6181_v15 }
 0x36f   :  { %v5458_v19 = vpop.f32.mrb[33].mxu0 }
 0x370   :  { %v5459_v21 = vadd.f32 %v5458_v19, %v5457_v17  ;;  %v5460_v23 = vpop.f32.mrb[34].mxu0 }
 0x371   :  { %3683 = vmatpush1.bf16.msra.mxu1 %v6179_v16  ;;  %v5461_v4 = vpop.f32.mrb[35].mxu0 }
 0x372   :  { %v2262_v43 = vadd.f32 %v5459_v21, %v2222_v20  ;;  %3684 = vmatprep.subr.bf16.mxu1 %v6184_v18 }
 0x374   :  { %2267 = vst [vmem:[#allocation15] sm:$0xf] %v2262_v43 }
 0x375   :  { %3685 = vmatpush1.bf16.msra.mxu1 %v6182_v24 }
 0x376   :  { %3686 = vmatprep.subr.bf16.mxu1 %v6187_v13 }
 0x379   :  { %3687 = vmatpush1.bf16.msra.mxu1 %v6185_v27 }
 0x37c   :  { %3689 = vmatmul.mubr.bf16.vlgmr.msra.gmra.mrb[16].mxu1 %v6700_v26 }
 0x3cf   :  { %v3526_v34 = vpop.f32.mrb[12].mxu1 }
 0x3d0   :  { %v6715_v37 = vadd.f32 %v3526_v34, %v2464_v29  ;;  %v3528_v35 = vpop.f32.mrb[13].mxu1 }
 0x3d1   :  { %v3530_v36 = vpop.f32.mrb[14].mxu1  ;;  %v6747_v26 = vadd.f32 %v3528_v35, %v2468_v31 }
 0x3d2   :  { %v3531_v38 = vpop.f32.mrb[15].mxu1  ;;  %3701 = vrot.lane.b32.xlu1 %v6715_v37, %s6438_s6  ;;  %3698 = vrot.lane.b32.xlu0 %v6715_v37, %s6439_s19 }
 0x3d6   :  { %3707 = vrot.lane.b32.xlu1 %v6715_v37, %s6440_s20  ;;  %3704 = vrot.lane.b32.xlu0 %v6715_v37, %s6441_s21 }
 0x3da   :  { %3713 = vrot.lane.b32.xlu1 %v6715_v37, %s6442_s5  ;;  %3710 = vrot.lane.b32.xlu0 %v6715_v37, %s6443_s24 }
 0x3de   :  { %3719 = vrot.lane.b32.xlu1 %v6715_v37, %s6421_s23  ;;  %3716 = vrot.lane.b32.xlu0 %v6715_v37, %s6444_s30 }
 0x3e2   :  { %3725 = vrot.lane.b32.xlu1 %v6715_v37, %s6428_s12  ;;  %3722 = vrot.lane.b32.xlu0 %v6715_v37, %s6445_s2 }
 0x3e6   :  { %3731 = vrot.lane.b32.xlu1 %v6715_v37, %s6446_s16  ;;  %3728 = vrot.lane.b32.xlu0 %v6715_v37, %s6447_s22 }
 0x3ea   :  { %3737 = vrot.lane.b32.xlu1 %v6715_v37, %s6448_s25  ;;  %3734 = vrot.lane.b32.xlu0 %v6715_v37, %s6434_s18 }
 0x3ee   :  { %3744 = vrot.lane.b32.xlu1 %v6747_v26, %s6439_s19  ;;  %3740 = vrot.lane.b32.xlu0 %v6715_v37, %s6449_s26  ;;  %v3608_v40 = vpop.f32.mrb[36].mxu0 }
 0x3ef   :  { %v3610_v42 = vpop.f32.mrb[37].mxu0  ;;  %v6783_v46 = vadd.f32 %v3608_v40, %v2472_v44 }
 0x3f0   :  { %v3612_v25 = vpop.f32.mrb[38].mxu0  ;;  %v6815_v41 = vadd.f32 %v3610_v42, %v2476_v8 }
 0x3f1   :  { %v3613_v33 = vpop.f32.mrb[39].mxu0 }
 0x3f2   :  { %3750 = vrot.lane.b32.xlu1 %v6747_v26, %s6441_s21  ;;  %3747 = vrot.lane.b32.xlu0 %v6747_v26, %s6438_s6 }
 0x3f6   :  { %3756 = vrot.lane.b32.xlu1 %v6747_v26, %s6443_s24  ;;  %3753 = vrot.lane.b32.xlu0 %v6747_v26, %s6440_s20 }
 0x3fa   :  { %3762 = vrot.lane.b32.xlu1 %v6747_v26, %s6444_s30  ;;  %3759 = vrot.lane.b32.xlu0 %v6747_v26, %s6442_s5 }
 0x3fe   :  { %3768 = vrot.lane.b32.xlu1 %v6747_v26, %s6445_s2  ;;  %3765 = vrot.lane.b32.xlu0 %v6747_v26, %s6421_s23 }
 0x402   :  { %3774 = vrot.lane.b32.xlu1 %v6747_v26, %s6447_s22  ;;  %3771 = vrot.lane.b32.xlu0 %v6747_v26, %s6428_s12 }
 0x406   :  { %3780 = vrot.lane.b32.xlu1 %v6747_v26, %s6434_s18  ;;  %3777 = vrot.lane.b32.xlu0 %v6747_v26, %s6446_s16 }
 0x40a   :  { %3786 = vrot.lane.b32.xlu1 %v6747_v26, %s6449_s26  ;;  %3783 = vrot.lane.b32.xlu0 %v6747_v26, %s6448_s25 }
 0x40e   :  { %3793 = vrot.lane.b32.xlu1 %v6783_v46, %s6438_s6  ;;  %3790 = vrot.lane.b32.xlu0 %v6783_v46, %s6439_s19 }
 0x412   :  { %3799 = vrot.lane.b32.xlu1 %v6783_v46, %s6440_s20  ;;  %3796 = vrot.lane.b32.xlu0 %v6783_v46, %s6441_s21 }
 0x416   :  { %3805 = vrot.lane.b32.xlu1 %v6783_v46, %s6442_s5  ;;  %3802 = vrot.lane.b32.xlu0 %v6783_v46, %s6443_s24 }
 0x41a   :  { %3811 = vrot.lane.b32.xlu1 %v6783_v46, %s6421_s23  ;;  %3808 = vrot.lane.b32.xlu0 %v6783_v46, %s6444_s30 }
 0x41e   :  { %3817 = vrot.lane.b32.xlu1 %v6783_v46, %s6428_s12  ;;  %3814 = vrot.lane.b32.xlu0 %v6783_v46, %s6445_s2 }
 0x422   :  { %3823 = vrot.lane.b32.xlu1 %v6783_v46, %s6446_s16  ;;  %3820 = vrot.lane.b32.xlu0 %v6783_v46, %s6447_s22 }
 0x426   :  { %3829 = vrot.lane.b32.xlu1 %v6783_v46, %s6448_s25  ;;  %3826 = vrot.lane.b32.xlu0 %v6783_v46, %s6434_s18 }
 0x42a   :  { %3836 = vrot.lane.b32.xlu1 %v6815_v41, %s6439_s19  ;;  %3832 = vrot.lane.b32.xlu0 %v6783_v46, %s6449_s26 }
 0x42e   :  { %3842 = vrot.lane.b32.xlu1 %v6815_v41, %s6441_s21  ;;  %3839 = vrot.lane.b32.xlu0 %v6815_v41, %s6438_s6 }
 0x432   :  { %3848 = vrot.lane.b32.xlu1 %v6815_v41, %s6443_s24  ;;  %3845 = vrot.lane.b32.xlu0 %v6815_v41, %s6440_s20 }
 0x436   :  { %3854 = vrot.lane.b32.xlu1 %v6815_v41, %s6444_s30  ;;  %3851 = vrot.lane.b32.xlu0 %v6815_v41, %s6442_s5 }
 0x43a   :  { %3860 = vrot.lane.b32.xlu1 %v6815_v41, %s6445_s2  ;;  %3857 = vrot.lane.b32.xlu0 %v6815_v41, %s6421_s23 }
 0x444   :  { %v3702_v12 = vpop.permute.xlu1 %3701  ;;  %v3699_v47 = vpop.permute.xlu0 %3698 }
 0x445   :  { %v3881_v50 = vcombine.low %v6715_v37, %v3702_v12 }
 0x447   :  { %v3888_v55 = vrot.slane %v3881_v50, %v6838_v49 }
 0x448   :  { %v3708_v51 = vpop.permute.xlu1 %3707  ;;  %v3705_v52 = vpop.permute.xlu0 %3704 }
 0x449   :  { %v3889_v53 = vcombine.low %v3699_v47, %v3705_v52 }
 0x44b   :  { %v3896_v56 = vrot.slane %v3889_v53, %v6838_v49 }
 0x44c   :  { %v3714_v57 = vpop.permute.xlu1 %3713  ;;  %v3711_v58 = vpop.permute.xlu0 %3710 }
 0x44d   :  { %v3914_v60 = vcombine.high %v3888_v55, %v3896_v56  ;;  %v3897_v62 = vcombine.low %v3708_v51, %v3714_v57  ;;  %v3913_v14 = vcombine.low %v3888_v55, %v3896_v56 }
 0x44f   :  { %v3690_v61 = vpop.f32.mrb[16].mxu1  ;;  %v3904_v15 = vrot.slane %v3897_v62, %v6838_v49  ;;  %v3921_v30 = vrot.slane %v3913_v14, %v6856_v1  ;;  %v3928_v20 = vrot.slane %v3914_v60, %v6856_v1 }
 0x450   :  { %v6846_v63 = vadd.f32 %v3690_v61, %v2480_v59  ;;  %v3692_v2 = vpop.f32.mrb[17].mxu1  ;;  %v3720_v3 = vpop.permute.xlu1 %3719 }
 0x451   :  { %v3717_v5 = vpop.permute.xlu0 %3716  ;;  %v3694_v6 = vpop.f32.mrb[18].mxu1  ;;  %v6859_v32 = vadd.f32 %v3692_v2, %v2484_v0 }
 0x452   :  { %v3905_v9 = vcombine.low %v3711_v58, %v3717_v5  ;;  %v3695_v10 = vpop.f32.mrb[19].mxu1  ;;  %4448 = vrot.lane.b32.xlu1 %v6846_v63, %s6446_s16  ;;  %4442 = vrot.lane.b32.xlu0 %v6846_v63, %s6440_s20 }
 0x454   :  { %v3912_v7 = vrot.slane %v3905_v9, %v6838_v49  ;;  %v3726_v16 = vpop.permute.xlu1 %3725 }
 0x455   :  { %v3723_v17 = vpop.permute.xlu0 %3722  ;;  %v3949_v24 = vcombine.low %v3720_v3, %v3726_v16 }
 0x456   :  { %v3929_v18 = vcombine.low %v3904_v15, %v3912_v7  ;;  %v3930_v19 = vcombine.high %v3904_v15, %v3912_v7  ;;  %4452 = vrot.lane.b32.xlu1 %v6859_v32, %s6440_s20  ;;  %4445 = vrot.lane.b32.xlu0 %v6846_v63, %s6421_s23 }
 0x457   :  { %v3956_v37 = vrot.slane %v3949_v24, %v6838_v49 }
 0x458   :  { %v3937_v21 = vrot.slane %v3929_v18, %v6856_v1  ;;  %v3944_v23 = vrot.slane %v3930_v19, %v6856_v1  ;;  %v3732_v4 = vpop.permute.xlu1 %3731 }
 0x459   :  { %v3729_v43 = vpop.permute.xlu0 %3728 }
 0x45a   :  { %v3946_v13 = vcombine.high %v3921_v30, %v3937_v21  ;;  %v3947_v27 = vcombine.low %v3928_v20, %v3944_v23  ;;  %v3948_v28 = vcombine.high %v3928_v20, %v3944_v23  ;;  %4458 = vrot.lane.b32.xlu1 %v6859_v32, %s6446_s16  ;;  %v3957_v29 = vcombine.low %v3723_v17, %v3729_v43 }
 0x45b   :  { %4455 = vrot.lane.b32.xlu0 %v6859_v32, %s6421_s23  ;;  %s6452_s23 = smov [#allocation15]  }
 0x45c   :  { %v3738_v34 = vpop.permute.xlu1 %3737  ;;  %v3964_v35 = vrot.slane %v3957_v29, %v6838_v49 }
 0x45d   :  { %v3735_v36 = vpop.permute.xlu0 %3734  ;;  %v3965_v31 = vcombine.low %v3732_v4, %v3738_v34 }
 0x45e   :  { %3866 = vrot.lane.b32.xlu1 %v6815_v41, %s6447_s22  ;;  %v3982_v38 = vcombine.high %v3956_v37, %v3964_v35  ;;  %v3981_v33 = vcombine.low %v3956_v37, %v3964_v35 }
 0x45f   :  { %3863 = vrot.lane.b32.xlu0 %v6815_v41, %s6428_s12  ;;  %v3972_v44 = vrot.slane %v3965_v31, %v6838_v49  ;;  %s4903_s12 = sshll.u32 %s6452_s23, 4  ;;  %s4904_s12 = int_to_ptr.vmem [resolvable:$true] %s4903_s12 }
 0x460   :  { %v3745_v40 = vpop.permute.xlu1 %3744  ;;  %v3989_v51 = vrot.slane %v3981_v33, %v6856_v1  ;;  %v3996_v53 = vrot.slane %v3982_v38, %v6856_v1  ;;  %s6342_s11 = scalar_lea.vmem %s4904_s12, 64  ;;  %p6347_p1 = scmp.lt.s32.totalorder %s4904_s12, %s4904_s12 }
 0x461   :  { %v3741_v42 = vpop.permute.xlu0 %3740  ;;  %p6343_p0 = scmp.ne.s32.totalorder %s4904_s12, %s6342_s11  ;;  %p6348_p2 = scmp.lt.s32.totalorder %s6342_s11, %s6342_s11 }
 0x462   :  { %v3973_v25 = vcombine.low %v3735_v36, %v3741_v42  ;;  %3872 = vrot.lane.b32.xlu1 %v6815_v41, %s6434_s18 }
 0x463   :  { %3869 = vrot.lane.b32.xlu0 %v6815_v41, %s6446_s16  ;;  %p6349_p3 = por %p6348_p2, %p6347_p1 }
 0x464   :  { %v3980_v8 = vrot.slane %v3973_v25, %v6838_v49  ;;  %v3751_v11 = vpop.permute.xlu1 %3750 }
 0x465   :  { %v4025_v22 = vcombine.low %v3745_v40, %v3751_v11  ;;  %v3748_v45 = vpop.permute.xlu0 %3747  ;;  %p6350_p4 = pnand %p6349_p3, %p6343_p0 }
 0x466   :  { %v3997_v12 = vcombine.low %v3972_v44, %v3980_v8  ;;  %v3998_v47 = vcombine.high %v3972_v44, %v3980_v8  ;;  %v4017_v50 = vcombine.low %v6747_v26, %v3748_v45  ;;  %3878 = vrot.lane.b32.xlu1 %v6815_v41, %s6449_s26  ;;  %v3945_v26 = vcombine.low %v3921_v30, %v3937_v21 }
 0x467   :  { %v4032_v52 = vrot.slane %v4025_v22, %v6838_v49  ;;  %3875 = vrot.lane.b32.xlu0 %v6815_v41, %s6448_s25 }
 0x468   :  { %v4005_v54 = vrot.slane %v3997_v12, %v6856_v1  ;;  %v4012_v48 = vrot.slane %v3998_v47, %v6856_v1  ;;  %v4024_v55 = vrot.slane %v4017_v50, %v6838_v49  ;;  %v3757_v56 = vpop.permute.xlu1 %3756 }
 0x469   :  { %v3754_v57 = vpop.permute.xlu0 %3753 }
 0x46a   :  { %v4013_v58 = vcombine.low %v3989_v51, %v4005_v54  ;;  %v4014_v59 = vcombine.high %v3989_v51, %v4005_v54  ;;  %v4015_v60 = vcombine.low %v3996_v53, %v4012_v48  ;;  %v4016_v39 = vcombine.high %v3996_v53, %v4012_v48 }
 0x46b   :  { %v4049_v61 = vcombine.low %v4024_v55, %v4032_v52  ;;  %v4050_v62 = vcombine.high %v4024_v55, %v4032_v52 }
 0x46c   :  { %v3763_v0 = vpop.permute.xlu1 %3762  ;;  %v4425_v2 = vpack.c.bf16 %v4013_v58, %v3945_v26  ;;  %v6897_v3 = vpack.c.bf16 %v4014_v59, %v3946_v13  ;;  %v6899_v5 = vpack.c.bf16 %v4015_v60, %v3947_v27  ;;  %v6901_v6 = vpack.c.bf16 %v4016_v39, %v3948_v28 }
 0x46d   :  { %v4041_v9 = vcombine.low %v3757_v56, %v3763_v0  ;;  %v3760_v10 = vpop.permute.xlu0 %3759  ;;  %v4057_v30 = vrot.slane %v4049_v61, %v6856_v1  ;;  %v4064_v20 = vrot.slane %v4050_v62, %v6856_v1 }
 0x46e   :  { %v4033_v14 = vcombine.low %v3754_v57, %v3760_v10  ;;  %5493 = vmatprep.mubr.msk.bf16.mxu0 %vm4533_vm2, %v4425_v2 }
 0x46f   :  { %v4048_v15 = vrot.slane %v4041_v9, %v6838_v49 }
 0x470   :  { %v4040_v7 = vrot.slane %v4033_v14, %v6838_v49  ;;  %v3769_v16 = vpop.permute.xlu1 %3768 }
 0x471   :  { %v3766_v17 = vpop.permute.xlu0 %3765 }
 0x472   :  { %v4065_v18 = vcombine.low %v4040_v7, %v4048_v15  ;;  %v4066_v19 = vcombine.high %v4040_v7, %v4048_v15 }
 0x474   :  { %v4073_v21 = vrot.slane %v4065_v18, %v6856_v1  ;;  %v4080_v23 = vrot.slane %v4066_v19, %v6856_v1  ;;  %v3775_v4 = vpop.permute.xlu1 %3774 }
 0x475   :  { %v4093_v24 = vcombine.low %v3769_v16, %v3775_v4  ;;  %v3772_v43 = vpop.permute.xlu0 %3771 }
 0x476   :  { %v4081_v13 = vcombine.low %v4057_v30, %v4073_v21  ;;  %v4082_v27 = vcombine.high %v4057_v30, %v4073_v21  ;;  %v4083_v28 = vcombine.low %v4064_v20, %v4080_v23  ;;  %v4084_v29 = vcombine.high %v4064_v20, %v4080_v23 }
 0x477   :  { %v4100_v34 = vrot.slane %v4093_v24, %v6838_v49  ;;  %v4085_v37 = vcombine.low %v3766_v17, %v3772_v43 }
 0x478   :  { %v3781_v35 = vpop.permute.xlu1 %3780 }
 0x479   :  { %v4092_v36 = vrot.slane %v4085_v37, %v6838_v49  ;;  %v3778_v38 = vpop.permute.xlu0 %3777 }
 0x47b   :  { %v4117_v31 = vcombine.low %v4092_v36, %v4100_v34  ;;  %v4118_v40 = vcombine.high %v4092_v36, %v4100_v34 }
 0x47c   :  { %v3787_v42 = vpop.permute.xlu1 %3786 }
 0x47d   :  { %v4109_v25 = vcombine.low %v3781_v35, %v3787_v42  ;;  %v3784_v33 = vpop.permute.xlu0 %3783  ;;  %v4125_v50 = vrot.slane %v4117_v31, %v6856_v1  ;;  %v4132_v51 = vrot.slane %v4118_v40, %v6856_v1 }
 0x47e   :  { %v4101_v44 = vcombine.low %v3778_v38, %v3784_v33 }
 0x47f   :  { %v4116_v8 = vrot.slane %v4109_v25, %v6838_v49 }
 0x480   :  { %v4108_v11 = vrot.slane %v4101_v44, %v6838_v49  ;;  %v6914_v22 = vpop.permute.xlu1 %3793 }
 0x481   :  { %v6916_v45 = vpop.permute.xlu0 %3790 }
 0x482   :  { %v4133_v12 = vcombine.low %v4108_v11, %v4116_v8  ;;  %v4134_v47 = vcombine.high %v4108_v11, %v4116_v8 }
 0x484   :  { %v4141_v52 = vrot.slane %v4133_v12, %v6856_v1  ;;  %v4148_v53 = vrot.slane %v4134_v47, %v6856_v1  ;;  %v3800_v54 = vpop.permute.xlu1 %3799  ;;  %v4153_v47 = vcombine.low %v6783_v46, %v6914_v22 }
 0x485   :  { %v3797_v48 = vpop.permute.xlu0 %3796 }
 0x486   :  { %v4149_v55 = vcombine.low %v4125_v50, %v4141_v52  ;;  %v4150_v56 = vcombine.high %v4125_v50, %v4141_v52  ;;  %v4151_v26 = vcombine.low %v4132_v51, %v4148_v53  ;;  %v4152_v57 = vcombine.high %v4132_v51, %v4148_v53 }
 0x487   :  { %v4161_v40 = vcombine.low %v6916_v45, %v3797_v48 }
 0x488   :  { %v6922_v58 = vpack.c.bf16 %v4149_v55, %v4081_v13  ;;  %v6924_v59 = vpack.c.bf16 %v4150_v56, %v4082_v27  ;;  %v6926_v60 = vpack.c.bf16 %v4151_v26, %v4083_v28  ;;  %v6928_v39 = vpack.c.bf16 %v4152_v57, %v4084_v29  ;;  %v3806_v61 = vpop.permute.xlu1 %3805 }
 0x489   :  { %v3803_v62 = vpop.permute.xlu0 %3802  ;;  %v4169_v42 = vcombine.low %v3800_v54, %v3806_v61  ;;  %v6961_v54 = vrot.slane %v4161_v40, %v6838_v49 }
 0x48b   :  { %v6964_v46 = vrot.slane %v4169_v42, %v6838_v49 }
 0x48c   :  { %v3812_v0 = vpop.permute.xlu1 %3811 }
 0x48d   :  { %v3809_v2 = vpop.permute.xlu0 %3808 }
 0x48e   :  { %v4177_v35 = vcombine.low %v3803_v62, %v3809_v2  ;;  %v6973_v62 = vrot.slane %v4153_v47, %v6838_v49 }
 0x490   :  { %v3818_v9 = vpop.permute.xlu1 %3817 }
 0x491   :  { %v3815_v10 = vpop.permute.xlu0 %3814  ;;  %v4221_v44 = vcombine.low %v3812_v0, %v3818_v9 }
 0x494   :  { %v3824_v14 = vpop.permute.xlu1 %3823 }
 0x495   :  { %v3821_v15 = vpop.permute.xlu0 %3820 }
 0x496   :  { %v4229_v38 = vcombine.low %v3815_v10, %v3821_v15 }
 0x498   :  { %v3830_v7 = vpop.permute.xlu1 %3829  ;;  %v6954_v51 = vrot.slane %v4229_v38, %v6838_v49 }
 0x499   :  { %v3827_v16 = vpop.permute.xlu0 %3826  ;;  %v4237_v31 = vcombine.low %v3824_v14, %v3830_v7 }
 0x49b   :  { %v6957_v52 = vrot.slane %v4237_v31, %v6838_v49 }
 0x49c   :  { %v6930_v17 = vpop.permute.xlu1 %3836 }
 0x49d   :  { %v3833_v18 = vpop.permute.xlu0 %3832 }
 0x49e   :  { %v4245_v34 = vcombine.low %v3827_v16, %v3833_v18 }
 0x4a0   :  { %v6932_v19 = vpop.permute.xlu1 %3842  ;;  %v6944_v8 = vrot.slane %v4245_v34, %v6838_v49 }
 0x4a1   :  { %v6934_v30 = vpop.permute.xlu0 %3839  ;;  %v4297_v14 = vcombine.low %v6930_v17, %v6932_v19 }
 0x4a2   :  { %v4269_v56 = vcombine.low %v6957_v52, %v6944_v8  ;;  %v4289_v15 = vcombine.low %v6815_v41, %v6934_v30 }
 0x4a4   :  { %v3849_v20 = vpop.permute.xlu1 %3848  ;;  %v7003_v34 = vrot.slane %v4289_v15, %v6838_v49 }
 0x4a5   :  { %v3846_v21 = vpop.permute.xlu0 %3845 }
 0x4a8   :  { %v3855_v23 = vpop.permute.xlu1 %3854 }
 0x4a9   :  { %v3852_v4 = vpop.permute.xlu0 %3851  ;;  %v4313_v26 = vcombine.low %v3849_v20, %v3855_v23 }
 0x4aa   :  { %v4305_v57 = vcombine.low %v3846_v21, %v3852_v4  ;;  %v4185_v4 = vcombine.low %v6973_v62, %v6961_v54 }
 0x4ab   :  { %v6991_v17 = vrot.slane %v4313_v26, %v6838_v49 }
 0x4ac   :  { %v6936_v24 = vpop.permute.xlu1 %3860  ;;  %v6994_v41 = vrot.slane %v4305_v57, %v6838_v49  ;;  %v4193_v40 = vrot.slane %v4185_v4, %v6856_v1  ;;  %v4270_v4 = vcombine.high %v6957_v52, %v6944_v8 }
 0x4ad   :  { %v6938_v43 = vpop.permute.xlu0 %3857 }
 0x4c4   :  { %v4449_v13 = vpop.permute.xlu1 %4448  ;;  %v4443_v27 = vpop.permute.xlu0 %4442 }
 0x4c5   :  { %v4469_v36 = vcombine.low %v4443_v27, %v4449_v13  ;;  %v4277_v13 = vrot.slane %v4269_v56, %v6856_v1 }
 0x4c7   :  { %v4476_v50 = vrot.slane %v4469_v36, %v6838_v49 }
 0x4c8   :  { %v4453_v28 = vpop.permute.xlu1 %4452  ;;  %v4446_v29 = vpop.permute.xlu0 %4445 }
 0x4c9   :  { %v4461_v37 = vcombine.low %v6846_v63, %v4446_v29  ;;  %v6949_v63 = vrot.slane %v4177_v35, %v6838_v49  ;;  %v7000_v29 = vrot.slane %v4297_v14, %v6838_v49 }
 0x4cb   :  { %v4468_v25 = vrot.slane %v4461_v37, %v6838_v49  ;;  %v4201_v0 = vcombine.low %v6964_v46, %v6949_v63 }
 0x4cc   :  { %v4459_v33 = vpop.permute.xlu1 %4458 }
 0x4cd   :  { %v4485_v11 = vcombine.low %v4453_v28, %v4459_v33  ;;  %v4456_v12 = vpop.permute.xlu0 %4455  ;;  %v4493_v22 = vcombine.low %v4468_v25, %v4476_v50  ;;  %v4494_v7 = vcombine.high %v4468_v25, %v4476_v50  ;;  %v4337_v25 = vcombine.low %v6994_v41, %v6991_v17 }
 0x4ce   :  { %v4477_v45 = vcombine.low %v6859_v32, %v4456_v12  ;;  %v6968_v32 = vrot.slane %v4221_v44, %v6838_v49 }
 0x4cf   :  { %v4492_v53 = vrot.slane %v4485_v11, %v6838_v49  ;;  %v4501_v16 = vrot.slane %v4493_v22, %v6856_v1  ;;  %v4508_v37 = vrot.slane %v4494_v7, %v6856_v1  ;;  %v4321_v22 = vcombine.low %v7003_v34, %v7000_v29 }
 0x4d0   :  { %v4484_v48 = vrot.slane %v4477_v45, %v6838_v49  ;;  %v3867_v55 = vpop.permute.xlu1 %3866  ;;  %v4253_v10 = vcombine.low %v6968_v32, %v6954_v51  ;;  %v4345_v26 = vrot.slane %v4337_v25, %v6856_v1 }
 0x4d1   :  { %v3864_v61 = vpop.permute.xlu0 %3863  ;;  %v4365_v20 = vcombine.low %v6936_v24, %v3867_v55 }
 0x4d2   :  { %v4509_v2 = vcombine.low %v4484_v48, %v4492_v53  ;;  %v4510_v9 = vcombine.high %v4484_v48, %v4492_v53  ;;  %v4357_v21 = vcombine.low %v6938_v43, %v3864_v61  ;;  %v4209_v43 = vrot.slane %v4201_v0, %v6856_v1 }
 0x4d3   :  { %v4261_v28 = vrot.slane %v4253_v10, %v6856_v1  ;;  %v7007_v35 = vrot.slane %v4365_v20, %v6838_v49 }
 0x4d4   :  { %v4517_v18 = vrot.slane %v4509_v2, %v6856_v1  ;;  %v3873_v23 = vpop.permute.xlu1 %3872  ;;  %v4524_v30 = vrot.slane %v4510_v9, %v6856_v1  ;;  %v7010_v36 = vrot.slane %v4357_v21, %v6838_v49  ;;  %v4217_v45 = vcombine.low %v4193_v40, %v4209_v43 }
 0x4d5   :  { %v3870_v19 = vpop.permute.xlu0 %3869  ;;  %v4285_v42 = vcombine.low %v4261_v28, %v4277_v13  ;;  %v4329_v2 = vrot.slane %v4321_v22, %v6856_v1 }
 0x4d6   :  { %v4525_v27 = vcombine.low %v4501_v16, %v4517_v18  ;;  %v4526_v24 = vcombine.high %v4501_v16, %v4517_v18  ;;  %v4527_v50 = vcombine.low %v4508_v37, %v4524_v30  ;;  %v4389_v48 = vcombine.low %v7010_v36, %v7007_v35 }
 0x4d7   :  { %v4427_v56 = vpack.c.bf16 %v4285_v42, %v4217_v45  ;;  %v4353_v10 = vcombine.low %v4329_v2, %v4345_v26  ;;  %v4528_v7 = vcombine.high %v4508_v37, %v4524_v30  ;;  %v4218_v16 = vcombine.high %v4193_v40, %v4209_v43 }
 0x4d8   :  { %v3879_v38 = vpop.permute.xlu1 %3878  ;;  %v4529_v31 = vpack.c.bf16 %v4525_v27, %v4525_v27  ;;  %v4530_v47 = vpack.c.bf16 %v4526_v24, %v4526_v24  ;;  %v4531_v0 = vpack.c.bf16 %v4527_v50, %v4527_v50  ;;  %v4397_v9 = vrot.slane %v4389_v48, %v6856_v1 }
 0x4d9   :  { %v4381_v33 = vcombine.low %v3873_v23, %v3879_v38  ;;  %v3876_v44 = vpop.permute.xlu0 %3875  ;;  %v4532_v21 = vpack.c.bf16 %v4528_v7, %v4528_v7  ;;  %v4186_v30 = vcombine.high %v6973_v62, %v6961_v54  ;;  %v4284_v27 = vrot.slane %v4270_v4, %v6856_v1 }
 0x4da   :  { %v4373_v11 = vcombine.low %v3870_v19, %v3876_v44  ;;  %5555 = vmatprep.subr.msk.bf16.mxu0 %vm4546_vm3, %v4529_v31  ;;  %v4548_v12 = vsel %vm4546_vm3, %v4529_v31, 0  ;;  %v4628_v61 = vsel %vm4546_vm3, %v4530_v47, 0  ;;  %v4708_v20 = vsel %vm4546_vm3, %v4531_v0, 0 }
 0x4db   :  { %v4388_v53 = vrot.slane %v4381_v33, %v6838_v49  ;;  %5492 = vmatpush3.bf16.msra.mxu0 %v4548_v12  ;;  %v4254_v19 = vcombine.high %v6968_v32, %v6954_v51  ;;  %v4338_v51 = vcombine.high %v6994_v41, %v6991_v17  ;;  %v4390_v54 = vcombine.high %v7010_v36, %v7007_v35 }
 0x4dc   :  { %v4380_v55 = vrot.slane %v4373_v11, %v6838_v49  ;;  %5556 = vmatprep.subr.msk.bf16.mxu0 %vm4546_vm3, %v4530_v47  ;;  %v4322_v32 = vcombine.high %v7003_v34, %v7000_v29  ;;  %v4788_v38 = vsel %vm4546_vm3, %v4532_v21, 0 }
 0x4dd   :  { %v4268_v43 = vrot.slane %v4254_v19, %v6856_v1  ;;  %v4352_v37 = vrot.slane %v4338_v51, %v6856_v1 }
 0x4de   :  { %v4405_v57 = vcombine.low %v4380_v55, %v4388_v53  ;;  %5494 = vmatmul.mubr.msk.bf16.vlgmr.msra.gmra.mrb[40].mxu0 %vm4533_vm2, %v6922_v58  ;;  %v4286_v58 = vcombine.high %v4261_v28, %v4277_v13  ;;  %v4202_v13 = vcombine.high %v6964_v46, %v6949_v63  ;;  %v4406_v8 = vcombine.high %v4380_v55, %v4388_v53 }
 0x4df   :  { %5497 = vmatprep.mubr.msk.bf16.mxu0 %vm4533_vm2, %v4427_v56  ;;  %5502 = vmatpush3.bf16.msra.mxu0 %v4628_v61  ;;  %v4200_v63 = vrot.slane %v4186_v30, %v6856_v1  ;;  %v4287_v52 = vcombine.low %v4268_v43, %v4284_v27  ;;  %v4336_v17 = vrot.slane %v4322_v32, %v6856_v1 }
 0x4e0   :  { %v4413_v49 = vrot.slane %v4405_v57, %v6856_v1  ;;  %5557 = vmatprep.subr.msk.bf16.mxu0 %vm4546_vm3, %v4531_v0  ;;  %v4431_v18 = vpack.c.bf16 %v4286_v58, %v4218_v16  ;;  %v4216_v24 = vrot.slane %v4202_v13, %v6856_v1  ;;  %v4420_v62 = vrot.slane %v4406_v8, %v6856_v1 }
 0x4e1   :  { %v4355_v35 = vcombine.low %v4336_v17, %v4352_v37  ;;  %v4288_v34 = vcombine.high %v4268_v43, %v4284_v27  ;;  %v4356_v40 = vcombine.high %v4336_v17, %v4352_v37 }
 0x4e2   :  { %v4421_v14 = vcombine.low %v4397_v9, %v4413_v49  ;;  %v4422_v23 = vcombine.high %v4397_v9, %v4413_v49  ;;  %v4219_v46 = vcombine.low %v4200_v63, %v4216_v24  ;;  %v4220_v36 = vcombine.high %v4200_v63, %v4216_v24 }
 0x4e4   :  { %v4428_v15 = vpack.c.bf16 %v4421_v14, %v4353_v10  ;;  %v4435_v28 = vpack.c.bf16 %v4287_v52, %v4219_v46  ;;  %v4439_v31 = vpack.c.bf16 %v4288_v34, %v4220_v36 }
 0x4e6   :  { %5498 = vmatmul.mubr.msk.bf16.gmra.mrb[44].mxu0 %vm4533_vm2, %v4428_v15 }
 0x4e7   :  { %5503 = vmatprep.mubr.msk.bf16.mxu0 %vm4533_vm2, %v6897_v3  ;;  %v4354_v3 = vcombine.high %v4329_v2, %v4345_v26 }
 0x4ee   :  { %5504 = vmatmul.mubr.msk.bf16.vlgmr.msra.gmra.mrb[48].mxu0 %vm4533_vm2, %v6924_v59  ;;  %v4432_v59 = vpack.c.bf16 %v4422_v23, %v4354_v3 }
 0x4ef   :  { %5512 = vmatpush3.bf16.msra.mxu0 %v4708_v20  ;;  %5507 = vmatprep.mubr.msk.bf16.mxu0 %vm4533_vm2, %v4431_v18 }
 0x4f0   :  { %5558 = vmatprep.subr.msk.bf16.mxu0 %vm4546_vm3, %v4532_v21 }
 0x4f6   :  { %5508 = vmatmul.mubr.msk.bf16.gmra.mrb[52].mxu0 %vm4533_vm2, %v4432_v59 }
 0x4f7   :  { %5513 = vmatprep.mubr.msk.bf16.mxu0 %vm4533_vm2, %v6899_v5  ;;  %v4404_v5 = vrot.slane %v4390_v54, %v6856_v1 }
 0x4f9   :  { %v4423_v41 = vcombine.low %v4404_v5, %v4420_v62 }
 0x4fb   :  { %v4436_v29 = vpack.c.bf16 %v4423_v41, %v4355_v35 }
 0x4fe   :  { %5514 = vmatmul.mubr.msk.bf16.vlgmr.msra.gmra.mrb[56].mxu0 %vm4533_vm2, %v6926_v60  ;;  %v4424_v60 = vcombine.high %v4404_v5, %v4420_v62 }
 0x4ff   :  { %5522 = vmatpush3.bf16.msra.mxu0 %v4788_v38  ;;  %5517 = vmatprep.mubr.msk.bf16.mxu0 %vm4533_vm2, %v4435_v28 }
 0x500   :  { %v4440_v42 = vpack.c.bf16 %v4424_v60, %v4356_v40 }
 0x506   :  { %5518 = vmatmul.mubr.msk.bf16.gmra.mrb[60].mxu0 %vm4533_vm2, %v4436_v29 }
 0x507   :  { %5523 = vmatprep.mubr.msk.bf16.mxu0 %vm4533_vm2, %v6901_v6 }
 0x50e   :  { %5524 = vmatmul.mubr.msk.bf16.vlgmr.msra.gmra.mrb[64].mxu0 %vm4533_vm2, %v6928_v39 }
 0x50f   :  { %5527 = vmatprep.mubr.msk.bf16.mxu0 %vm4533_vm2, %v4439_v31 }
 0x516   :  { %5528 = vmatmul.mubr.msk.bf16.gmra.mrb[68].mxu0 %vm4533_vm2, %v4440_v42 }
 0x517   :  { %6353 = shalt.err (!%p6350_p4)
}
 0x518   :  { %s6354_s0 = scalar_lea.hbm %s7249_s8, 64 }
 0x519   :  { %p6355_p5 = scmp.ne.s32.totalorder %s7249_s8, %s6354_s0  ;;  %p6358_p6 = scmp.lt.u32.totalorder %s6354_s0, %s7249_s8 }
 0x51b   :  { %p6360_p7 = pnand %p6358_p6, %p6355_p5 }
 0x51d   :  { %6363 = shalt.err (!%p6360_p7)
}
 0x51e   :  { %4906 = dma.vmem_to_hbm [thread:$0]  %s4904_s12, 64, %s7249_s8, [#allocation16]  }
 0x51f   :  { %s6364_s14 = scalar_lea.vmem %s4894_s29, 192  ;;  %p6369_p9 = scmp.lt.s32.totalorder %s4894_s29, %s4894_s29 }
 0x520   :  { %p6365_p8 = scmp.ne.s32.totalorder %s4894_s29, %s6364_s14  ;;  %p6370_p10 = scmp.lt.s32.totalorder %s6364_s14, %s6364_s14 }
 0x522   :  { %p6371_p11 = por %p6370_p10, %p6369_p9 }
 0x524   :  { %p6372_p12 = pnand %p6371_p11, %p6365_p8 }
 0x526   :  { %6375 = shalt.err (!%p6372_p12)
}
 0x527   :  { %s6376_s20 = scalar_lea.hbm %s7248_s7, 192 }
 0x528   :  { %p6377_p13 = scmp.ne.s32.totalorder %s7248_s7, %s6376_s20  ;;  %p6380_p0 = scmp.lt.u32.totalorder %s6376_s20, %s7248_s7 }
 0x52a   :  { %p6382_p1 = pnand %p6380_p0, %p6377_p13 }
 0x52c   :  { %6385 = shalt.err (!%p6382_p1)
}
 0x52d   :  { %4896 = dma.vmem_to_hbm [thread:$0]  %s4894_s29, 192, %s7248_s7, [#allocation4]  }
 0x52e   :  { %s6454_s16 = smov [#allocation17]  }
 0x52f   :  { %s4915_s22 = sshll.u32 %s6454_s16, 4  ;;  %s4916_s22 = int_to_ptr.vmem [resolvable:$true] %s4915_s22 }
 0x530   :  { %s6386_s25 = scalar_lea.vmem %s4916_s22, 64  ;;  %p6391_p3 = scmp.lt.s32.totalorder %s4916_s22, %s4916_s22 }
 0x531   :  { %p6387_p2 = scmp.ne.s32.totalorder %s4916_s22, %s6386_s25  ;;  %p6392_p4 = scmp.lt.s32.totalorder %s6386_s25, %s6386_s25 }
 0x533   :  { %p6393_p5 = por %p6392_p4, %p6391_p3 }
 0x535   :  { %p6394_p6 = pnand %p6393_p5, %p6387_p2 }
 0x537   :  { %6397 = shalt.err (!%p6394_p6)
}
 0x538   :  { %s6398_s12 = scalar_lea.hbm %s7251_s10, 64 }
 0x539   :  { %p6399_p7 = scmp.ne.s32.totalorder %s7251_s10, %s6398_s12  ;;  %p6402_p8 = scmp.lt.u32.totalorder %s6398_s12, %s7251_s10 }
 0x53b   :  { %p6404_p9 = pnand %p6402_p8, %p6399_p7 }
 0x53d   :  { %6407 = shalt.err (!%p6404_p9)
}
 0x53e   :  { %4918 = dma.vmem_to_hbm [thread:$0]  %s4916_s22, 64, %s7251_s10, [#allocation16]  }
 0x5b1   :  { %v5495_v1 = vpop.f32.mrb[40].mxu0 }
 0x5b2   :  { %4857 = vst.msk [vmem:[%s7250_s9 + $0x10] sm:$0xff] %vm142_vm1, %v5495_v1  ;;  %v4584_v6 = vpop.f32.mrb[41].mxu0 }
 0x5b3   :  { %4855 = vst.msk [vmem:[%s7250_s9] sm:$0xff] %vm142_vm1, %v4584_v6  ;;  %v5496_v39 = vpop.f32.mrb[42].mxu0 }
 0x5b4   :  { %4858 = vst.msk [vmem:[%s7250_s9 + $0x18] sm:$0xff] %vm142_vm1, %v5496_v39  ;;  %v4587_v25 = vpop.f32.mrb[43].mxu0 }
 0x5b5   :  { %4856 = vst.msk [vmem:[%s7250_s9 + $0x8] sm:$0xff] %vm142_vm1, %v4587_v25 }
 0x5b9   :  { %v5499_v33 = vpop.f32.mrb[44].mxu0 }
 0x5ba   :  { %4861 = vst.msk [vmem:[%s7250_s9 + $0x30] sm:$0xff] %vm142_vm1, %v5499_v33  ;;  %v4600_v44 = vpop.f32.mrb[45].mxu0 }
 0x5bb   :  { %4859 = vst.msk [vmem:[%s7250_s9 + $0x20] sm:$0xff] %vm142_vm1, %v4600_v44  ;;  %v5500_v11 = vpop.f32.mrb[46].mxu0 }
 0x5bc   :  { %4862 = vst.msk [vmem:[%s7250_s9 + $0x38] sm:$0xff] %vm142_vm1, %v5500_v11  ;;  %v4603_v12 = vpop.f32.mrb[47].mxu0 }
 0x5bd   :  { %4860 = vst.msk [vmem:[%s7250_s9 + $0x28] sm:$0xff] %vm142_vm1, %v4603_v12 }
 0x5c1   :  { %v5505_v47 = vpop.f32.mrb[48].mxu0 }
 0x5c2   :  { %4865 = vst.msk [vmem:[%s7250_s9 + $0x50] sm:$0xff] %vm142_vm1, %v5505_v47  ;;  %v4664_v50 = vpop.f32.mrb[49].mxu0 }
 0x5c3   :  { %4863 = vst.msk [vmem:[%s7250_s9 + $0x40] sm:$0xff] %vm142_vm1, %v4664_v50  ;;  %v5506_v45 = vpop.f32.mrb[50].mxu0 }
 0x5c4   :  { %4866 = vst.msk [vmem:[%s7250_s9 + $0x58] sm:$0xff] %vm142_vm1, %v5506_v45  ;;  %v4667_v53 = vpop.f32.mrb[51].mxu0 }
 0x5c5   :  { %4864 = vst.msk [vmem:[%s7250_s9 + $0x48] sm:$0xff] %vm142_vm1, %v4667_v53 }
 0x5c9   :  { %v5509_v22 = vpop.f32.mrb[52].mxu0 }
 0x5ca   :  { %4869 = vst.msk [vmem:[%s7250_s9 + $0x70] sm:$0xff] %vm142_vm1, %v5509_v22  ;;  %v4680_v48 = vpop.f32.mrb[53].mxu0 }
 0x5cb   :  { %4867 = vst.msk [vmem:[%s7250_s9 + $0x60] sm:$0xff] %vm142_vm1, %v4680_v48  ;;  %v5510_v55 = vpop.f32.mrb[54].mxu0 }
 0x5cc   :  { %4870 = vst.msk [vmem:[%s7250_s9 + $0x78] sm:$0xff] %vm142_vm1, %v5510_v55  ;;  %v4683_v56 = vpop.f32.mrb[55].mxu0 }
 0x5cd   :  { %4868 = vst.msk [vmem:[%s7250_s9 + $0x68] sm:$0xff] %vm142_vm1, %v4683_v56 }
 0x5d1   :  { %v5515_v26 = vpop.f32.mrb[56].mxu0 }
 0x5d2   :  { %4873 = vst.msk [vmem:[%s7250_s9 + $0x90] sm:$0xff] %vm142_vm1, %v5515_v26  ;;  %v4744_v57 = vpop.f32.mrb[57].mxu0 }
 0x5d3   :  { %4871 = vst.msk [vmem:[%s7250_s9 + $0x80] sm:$0xff] %vm142_vm1, %v4744_v57  ;;  %v5516_v61 = vpop.f32.mrb[58].mxu0 }
 0x5d4   :  { %4874 = vst.msk [vmem:[%s7250_s9 + $0x98] sm:$0xff] %vm142_vm1, %v5516_v61  ;;  %v4747_v0 = vpop.f32.mrb[59].mxu0 }
 0x5d5   :  { %4872 = vst.msk [vmem:[%s7250_s9 + $0x88] sm:$0xff] %vm142_vm1, %v4747_v0 }
 0x5d9   :  { %v5519_v2 = vpop.f32.mrb[60].mxu0 }
 0x5da   :  { %4877 = vst.msk [vmem:[%s7250_s9 + $0xb0] sm:$0xff] %vm142_vm1, %v5519_v2  ;;  %v4760_v9 = vpop.f32.mrb[61].mxu0 }
 0x5db   :  { %4875 = vst.msk [vmem:[%s7250_s9 + $0xa0] sm:$0xff] %vm142_vm1, %v4760_v9  ;;  %v5520_v49 = vpop.f32.mrb[62].mxu0 }
 0x5dc   :  { %4878 = vst.msk [vmem:[%s7250_s9 + $0xb8] sm:$0xff] %vm142_vm1, %v5520_v49  ;;  %v4763_v10 = vpop.f32.mrb[63].mxu0 }
 0x5dd   :  { %4876 = vst.msk [vmem:[%s7250_s9 + $0xa8] sm:$0xff] %vm142_vm1, %v4763_v10 }
 0x5e1   :  { %v5525_v14 = vpop.f32.mrb[64].mxu0 }
 0x5e2   :  { %4881 = vst.msk [vmem:[%s7250_s9 + $0xd0] sm:$0xff] %vm142_vm1, %v5525_v14  ;;  %v4824_v15 = vpop.f32.mrb[65].mxu0 }
 0x5e3   :  { %4879 = vst.msk [vmem:[%s7250_s9 + $0xc0] sm:$0xff] %vm142_vm1, %v4824_v15  ;;  %v5526_v58 = vpop.f32.mrb[66].mxu0 }
 0x5e4   :  { %4882 = vst.msk [vmem:[%s7250_s9 + $0xd8] sm:$0xff] %vm142_vm1, %v5526_v58  ;;  %v4827_v7 = vpop.f32.mrb[67].mxu0 }
 0x5e5   :  { %4880 = vst.msk [vmem:[%s7250_s9 + $0xc8] sm:$0xff] %vm142_vm1, %v4827_v7 }
 0x5e9   :  { %v5529_v16 = vpop.f32.mrb[68].mxu0 }
 0x5ea   :  { %4885 = vst.msk [vmem:[%s7250_s9 + $0xf0] sm:$0xff] %vm142_vm1, %v5529_v16  ;;  %v4840_v18 = vpop.f32.mrb[69].mxu0 }
 0x5eb   :  { %4883 = vst.msk [vmem:[%s7250_s9 + $0xe0] sm:$0xff] %vm142_vm1, %v4840_v18  ;;  %v5530_v20 = vpop.f32.mrb[70].mxu0 }
 0x5ec   :  { %4886 = vst.msk [vmem:[%s7250_s9 + $0xf8] sm:$0xff] %vm142_vm1, %v5530_v20  ;;  %v4843_v21 = vpop.f32.mrb[71].mxu0 }
 0x5ed   :  { %4884 = vst.msk [vmem:[%s7250_s9 + $0xe8] sm:$0xff] %vm142_vm1, %v4843_v21 }
 0x5ee   :  { %6416 = dma.done.wait [#allocation4], 192  }
 0x5ef   :  { %6417 = vsyncadd [#allocation4], 4294967104 }
 0x5f0   :  { %6418 = dma.done.wait [#allocation16], 128  }
 0x5f1   :  { %6419 = vsyncadd [#allocation16], 4294967168 }
 0x5f2   :  { %4930 = vsyncpa [#allocation3], 1 }
 0x5f3   :  { %4931 = vsyncpa [#allocation6], 1 }
 0x5f4   :  { %4932 = vsyncpa [#allocation9], 1 }
 0x5f5   :  { %4933 = vsyncpa [#allocation12], 1 }
 0x5f6   :  { %4934 = vsyncpa [#allocation4], 1 }
 0x5f7   :  { %4935 = vsyncpa [#allocation16], 1 }

</bundles_post_ra>
